<compile_context>
chip_gen: v6e
topology: v6e:2x2x1
jax: 0.10.0
libtpu: 0.0.40
codegen_flags: <defaults>
</compile_context>

<pallas_src>
import functools

import jax
import jax.numpy as jnp
from jax.experimental import pallas as pl
from jax.experimental.pallas import tpu as pltpu


def _round_up(v, m):
    return ((v + m - 1) // m) * m


def _pick_tile(n_pad, cap):
    """Largest multiple of 128 that divides n_pad and is <= cap (n_pad % 128 == 0)."""
    t = min(n_pad, max(128, (cap // 128) * 128))
    while n_pad % t:
        t -= 128
    return t


def _vmem_limit_bytes():
    """Per-generation scoped-VMEM budget (v7x: 64 MiB/TC; v5e/v6e: 128 MiB)."""
    try:
        cap = pltpu.get_tpu_info().vmem_capacity_bytes
    except Exception:
        cap = 64 * 1024 * 1024          # conservative (v7x per-TC) fallback
    return int(min(max(cap * 3 // 4, 32 * 1024 * 1024), 96 * 1024 * 1024))


def _pick_tk(n_pad, tm, fin_pad, vmem_limit):
    """Size the A-streaming tile so double-buffered A (int8) + x (bf16) fit the budget."""
    budget = max(8 * 1024 * 1024, vmem_limit // 2)
    per_tk = 2 * tm * 1 + 2 * fin_pad * 2      # A dbl-buf int8 + xk dbl-buf bf16, per tk
    return _pick_tile(n_pad, budget // per_tk)


# ---------------------------------------------------------------------------
# Kernel 1: one GraphSage layer, tiled over (node-row blocks, adjacency-K blocks)
#   k == 0     : acc = 0 ; self = x[i] @ Wl            (hoisted off the epilogue)
#   every k    : acc += counts[i, k] @ x[k]             (int8 -> bf16, MXU, f32 acc)
#   k == last  : agg = acc * (1/deg) ; h = self + agg @ Wr + (bl + br)
#                h = h * rsqrt(max(||h||^2, eps^2)) ; relu
# ---------------------------------------------------------------------------
def sage_layer_kernel(a_ref, xk_ref, xi_ref, invd_ref, wl_ref, wr_ref, b_ref,
                      out_ref, acc_ref, self_ref):
    k = pl.program_id(1)

    @pl.when(k == 0)
    def _():
        acc_ref[...] = jnp.zeros_like(acc_ref)
        # self-term overlaps the A@x streaming instead of sitting in the epilogue
        self_ref[...] = jnp.dot(xi_ref[...], wl_ref[...],
                                preferred_element_type=jnp.float32)

    # int8 edge counts -> bf16 on the VPU (loop is DMA-bound; upcast is free and
    # keeps the same kernel portable to v7x, which has no integer MXU path).
    a = a_ref[...].astype(jnp.bfloat16)
    acc_ref[...] += jnp.dot(a, xk_ref[...], preferred_element_type=jnp.float32)

    @pl.when(k == pl.num_programs(1) - 1)
    def _():
        # exact scatter-mean: integer counts @ x, scaled by per-row 1/deg in f32
        agg = (acc_ref[...] * invd_ref[...]).astype(jnp.bfloat16)
        h = self_ref[...] + jnp.dot(agg, wr_ref[...],
                                    preferred_element_type=jnp.float32)
        h = h + b_ref[...]
        # F.normalize(p=2, dim=1): rsqrt runs on the EUP slot
        sq = jnp.sum(h * h, axis=1, keepdims=True)
        h = h * jax.lax.rsqrt(jnp.maximum(sq, 1e-24))
        # ReLU applied by GNNStack.forward after each conv.
        # NOTE: padded node rows become non-zero here (bias -> normalize -> relu of a
        # zero row); they are harmless because A's padded columns are zero and the
        # padded rows are sliced off at the end — do not rely on them staying zero.
        out_ref[...] = jnp.maximum(h, 0.0).astype(out_ref.dtype)


def sage_layer(x_pad, a_pad, invd_pad, wl, wr, bias, *, tm, tk, vmem_limit):
    n_pad, fin_pad = x_pad.shape
    h_pad = wl.shape[1]
    grid = (n_pad // tm, n_pad // tk)
    return pl.pallas_call(
        sage_layer_kernel,
        out_shape=jax.ShapeDtypeStruct((n_pad, h_pad), jnp.bfloat16),
        grid_spec=pltpu.PrefetchScalarGridSpec(
            num_scalar_prefetch=0,
            grid=grid,
            in_specs=[
                pl.BlockSpec((tm, tk), lambda i, k: (i, k)),           # A counts (int8)
                pl.BlockSpec((tk, fin_pad), lambda i, k: (k, 0)),      # x, aggregation stream
                pl.BlockSpec((tm, fin_pad), lambda i, k: (i, 0)),      # x, self rows
                pl.BlockSpec((tm, 1), lambda i, k: (i, 0)),            # 1/deg per row (f32)
                pl.BlockSpec((fin_pad, h_pad), lambda i, k: (0, 0)),   # Wl
                pl.BlockSpec((fin_pad, h_pad), lambda i, k: (0, 0)),   # Wr
                pl.BlockSpec((1, h_pad), lambda i, k: (0, 0)),         # bl + br
            ],
            out_specs=pl.BlockSpec((tm, h_pad), lambda i, k: (i, 0)),
            scratch_shapes=[pltpu.VMEM((tm, fin_pad), jnp.float32),    # A@x accumulator
                            pltpu.VMEM((tm, h_pad), jnp.float32)],     # x@Wl self term
        ),
        compiler_params=pltpu.CompilerParams(
            dimension_semantics=("parallel", "arbitrary"),
            vmem_limit_bytes=vmem_limit,
        ),
    )(a_pad, x_pad, x_pad, invd_pad, wl, wr, bias)


# ---------------------------------------------------------------------------
# Kernel 2: post_mp (Linear -> Dropout(eval no-op) -> Linear) + masked log_softmax,
# gridded over node-row blocks; padded lane columns are masked out of the softmax.
# ---------------------------------------------------------------------------
def post_mp_kernel(x_ref, w1_ref, b1_ref, w2_ref, b2_ref, out_ref, *, out_dim):
    h = jnp.dot(x_ref[...], w1_ref[...], preferred_element_type=jnp.float32)
    h = h + b1_ref[...]
    logits = jnp.dot(h.astype(jnp.bfloat16), w2_ref[...],
                     preferred_element_type=jnp.float32) + b2_ref[...]
    col = jax.lax.broadcasted_iota(jnp.int32, logits.shape, 1)
    valid = col < out_dim
    masked = jnp.where(valid, logits, jnp.float32(-1e30))
    m = jnp.max(masked, axis=1, keepdims=True)
    lse = jnp.log(jnp.sum(jnp.exp(masked - m), axis=1, keepdims=True)) + m
    out_ref[...] = jnp.where(valid, logits - lse, 0.0)


def post_mp(x_pad, w1, b1, w2, b2, out_dim, *, tm, vmem_limit):
    n_pad, h_in_pad = x_pad.shape
    h_pad = w1.shape[1]
    o_pad = w2.shape[1]
    kernel = functools.partial(post_mp_kernel, out_dim=out_dim)
    return pl.pallas_call(
        kernel,
        out_shape=jax.ShapeDtypeStruct((n_pad, o_pad), jnp.float32),
        grid_spec=pltpu.PrefetchScalarGridSpec(
            num_scalar_prefetch=0,
            grid=(n_pad // tm,),
            in_specs=[
                pl.BlockSpec((tm, h_in_pad), lambda i: (i, 0)),
                pl.BlockSpec((h_in_pad, h_pad), lambda i: (0, 0)),
                pl.BlockSpec((1, h_pad), lambda i: (0, 0)),
                pl.BlockSpec((h_pad, o_pad), lambda i: (0, 0)),
                pl.BlockSpec((1, o_pad), lambda i: (0, 0)),
            ],
            out_specs=pl.BlockSpec((tm, o_pad), lambda i: (i, 0)),
        ),
        compiler_params=pltpu.CompilerParams(
            dimension_semantics=("parallel",),
            vmem_limit_bytes=vmem_limit,
        ),
    )(x_pad, w1, b1, w2, b2)


# ---------------------------------------------------------------------------
# Glue: adjacency build, parameter init, padding, forward
# ---------------------------------------------------------------------------
def build_mean_adjacency(edge_index, num_nodes, n_pad):
    """Integer edge counts (int8) plus per-row f32 inverse in-degree.
    counts[i, j] = #edges j->i ; (counts @ x) * inv_deg == scatter_mean(x[src], dst)."""
    src, dst = edge_index[0], edge_index[1]
    counts = jnp.zeros((num_nodes, num_nodes), jnp.int32).at[dst, src].add(1)
    deg = jnp.sum(counts, axis=1, keepdims=True).astype(jnp.float32)
    inv_deg = 1.0 / jnp.maximum(deg, 1.0)
    # TODO(synk): int8 assumes < 128 parallel edges per (dst, src) pair; widen if needed.
    a = jnp.pad(counts.astype(jnp.int8),
                ((0, n_pad - num_nodes), (0, n_pad - num_nodes)))
    invd = jnp.pad(inv_deg, ((0, n_pad - num_nodes), (0, 0)))
    return a, invd


def init_gnnstack_params(key, input_dim, hidden_dim, output_dim, num_layers, heads=1):
    """Deterministic synthetic parameters, stored transposed ([in, out])."""
    params = {"convs": []}
    dims_in = [input_dim] + [heads * hidden_dim] * (num_layers - 1)
    for d_in in dims_in:
        key, k1, k2, k3, k4 = jax.random.split(key, 5)
        s = 1.0 / jnp.sqrt(jnp.float32(d_in))
        params["convs"].append({
            "wl": jax.random.uniform(k1, (d_in, hidden_dim), jnp.float32, -s, s),
            "bl": jax.random.uniform(k2, (hidden_dim,), jnp.float32, -s, s),
            "wr": jax.random.uniform(k3, (d_in, hidden_dim), jnp.float32, -s, s),
            "br": jax.random.uniform(k4, (hidden_dim,), jnp.float32, -s, s),
        })
    key, k1, k2, k3, k4 = jax.random.split(key, 5)
    s1 = 1.0 / jnp.sqrt(jnp.float32(heads * hidden_dim))
    s2 = 1.0 / jnp.sqrt(jnp.float32(hidden_dim))
    params["post_mp"] = {
        "w1": jax.random.uniform(k1, (heads * hidden_dim, hidden_dim), jnp.float32, -s1, s1),
        "b1": jax.random.uniform(k2, (hidden_dim,), jnp.float32, -s1, s1),
        "w2": jax.random.uniform(k3, (hidden_dim, output_dim), jnp.float32, -s2, s2),
        "b2": jax.random.uniform(k4, (output_dim,), jnp.float32, -s2, s2),
    }
    return params


def _pad2(w, rows, cols):
    return jnp.pad(w, ((0, rows - w.shape[0]), (0, cols - w.shape[1])))


def prepare_padded_params(params):
    """Pad every lane dim to a multiple of 128; keep Wl/Wr separate (bf16), sum biases (f32)."""
    padded = {"convs": []}
    for c in params["convs"]:
        d_in, h = c["wl"].shape
        fin_p, h_p = _round_up(d_in, 128), _round_up(h, 128)
        padded["convs"].append({
            "wl": _pad2(c["wl"], fin_p, h_p).astype(jnp.bfloat16),
            "wr": _pad2(c["wr"], fin_p, h_p).astype(jnp.bfloat16),
            "b": jnp.pad((c["bl"] + c["br"])[None, :],
                         ((0, 0), (0, h_p - h))).astype(jnp.float32),
            "fin_pad": fin_p, "h_pad": h_p, "h": h,
        })
    pm = params["post_mp"]
    h_in, h = pm["w1"].shape
    o = pm["w2"].shape[1]
    hin_p, h_p, o_p = _round_up(h_in, 128), _round_up(h, 128), _round_up(o, 128)
    padded["post_mp"] = {
        "w1": _pad2(pm["w1"], hin_p, h_p).astype(jnp.bfloat16),
        "b1": jnp.pad(pm["b1"][None, :], ((0, 0), (0, h_p - h))).astype(jnp.float32),
        "w2": _pad2(pm["w2"], h_p, o_p).astype(jnp.bfloat16),
        "b2": jnp.pad(pm["b2"][None, :], ((0, 0), (0, o_p - o))).astype(jnp.float32),
        "out_dim": o,
    }
    return padded


def gnnstack_forward(params, x, edge_index, num_layers, emb=False):
    n, f = x.shape
    padded = prepare_padded_params(params)
    # Pad N only to 128 (not to the row tile) to minimize quadratic adjacency waste.
    n_pad = _round_up(n, 128)
    a_pad, invd_pad = build_mean_adjacency(edge_index, n, n_pad)
    fin_pad0 = padded["convs"][0]["fin_pad"]
    x_pad = jnp.pad(x, ((0, n_pad - n), (0, fin_pad0 - f))).astype(jnp.bfloat16)

    vmem_limit = _vmem_limit_bytes()
    tm = _pick_tile(n_pad, 1024)             # large row tile -> fewer x re-streams
    for i in range(num_layers):
        c = padded["convs"][i]
        tk = _pick_tk(n_pad, tm, c["fin_pad"], vmem_limit)   # big K tile; tk=n_pad for small N
        x_pad = sage_layer(x_pad, a_pad, invd_pad, c["wl"], c["wr"], c["b"],
                           tm=tm, tk=tk, vmem_limit=vmem_limit)
    if emb:
        return x_pad[:n, :padded["convs"][-1]["h"]].astype(jnp.float32)
    pm = padded["post_mp"]
    out_pad = post_mp(x_pad, pm["w1"], pm["b1"], pm["w2"], pm["b2"],
                      pm["out_dim"], tm=tm, vmem_limit=vmem_limit)
    return out_pad[:n, :pm["out_dim"]]


def _reference_forward(params, x, edge_index, num_layers):
    """Pure-JAX f32 reference of the same eval-mode forward."""
    n = x.shape[0]
    src, dst = edge_index[0], edge_index[1]
    a = jnp.zeros((n, n), jnp.float32).at[dst, src].add(1.0)
    a = a / jnp.maximum(jnp.sum(a, axis=1, keepdims=True), 1.0)
    h = x
    for i in range(num_layers):
        c = params["convs"][i]
        agg = a @ h
        out = h @ c["wl"] + c["bl"][None, :] + agg @ c["wr"] + c["br"][None, :]
        nrm = jnp.sqrt(jnp.sum(out * out, axis=1, keepdims=True))
        out = out / jnp.maximum(nrm, 1e-12)
        h = jnp.maximum(out, 0.0)
    pm = params["post_mp"]
    logits = (h @ pm["w1"] + pm["b1"][None, :]) @ pm["w2"] + pm["b2"][None, :]
    return jax.nn.log_softmax(logits, axis=1)


# ---------------------------------------------------------------------------
if __name__ == "__main__":
    # Small synthetic graph: 300 nodes, 1500 directed edges (padded to 384 -> a
    # single (tm=tk=384) grid point, exercising the small-N fast path).
    N, E = 300, 1500
    INPUT_DIM, HIDDEN_DIM, OUTPUT_DIM = 8, 32, 4
    NUM_LAYERS = 2

    key = jax.random.PRNGKey(0)
    k_x, k_e, k_p = jax.random.split(key, 3)

    x = jax.random.normal(k_x, (N, INPUT_DIM), jnp.float32)
    edge_index = jax.random.randint(k_e, (2, E), 0, N, jnp.int32)

    params = init_gnnstack_params(k_p, INPUT_DIM, HIDDEN_DIM, OUTPUT_DIM, NUM_LAYERS)

    out = gnnstack_forward(params, x, edge_index, NUM_LAYERS, emb=False)
    out = jax.block_until_ready(out)

    assert out.shape == (N, OUTPUT_DIM)
    assert bool(jnp.all(jnp.isfinite(out)))
    # rows of log_softmax should exp-sum to ~1
    assert jnp.allclose(jnp.sum(jnp.exp(out), axis=1), 1.0, atol=1e-3)
    # loose check against the f32 reference (kernel uses bf16 MXU operands)
    ref = _reference_forward(params, x, edge_index, NUM_LAYERS)
    assert jnp.max(jnp.abs(out - ref)) < 0.1
    print("KERNEL_OK")
</pallas_src>

<mosaic_0001>
module attributes {stable_mosaic.version = 11 : i64} {
  func.func @sage_layer_kernel(%arg0: i32, %arg1: i32, %arg2: memref<384x384xi8, #tpu.memory_space<vmem>>, %arg3: memref<384x128xbf16, #tpu.memory_space<vmem>>, %arg4: memref<384x128xbf16, #tpu.memory_space<vmem>>, %arg5: memref<384x1xf32, #tpu.memory_space<vmem>>, %arg6: memref<128x128xbf16, #tpu.memory_space<vmem>>, %arg7: memref<128x128xbf16, #tpu.memory_space<vmem>>, %arg8: memref<1x128xf32, #tpu.memory_space<vmem>>, %arg9: memref<384x128xbf16, #tpu.memory_space<vmem>>, %arg10: memref<384x128xf32, #tpu.memory_space<vmem>>, %arg11: memref<384x128xf32, #tpu.memory_space<vmem>>) attributes {dimension_semantics = [#tpu.dimension_semantics<parallel>, #tpu.dimension_semantics<arbitrary>], iteration_bounds = array<i64: 1, 1>, scalar_prefetch = 0 : i64, scratch_operands = 2 : i64, tpu.core_type = #tpu.core_type<tc>, window_params = [{transform_indices = @transform_0, window_bounds = array<i64: 384, 384>}, {transform_indices = @transform_1, window_bounds = array<i64: 384, 128>}, {transform_indices = @transform_2, window_bounds = array<i64: 384, 128>}, {transform_indices = @transform_3, window_bounds = array<i64: 384, 1>}, {pipeline_mode = #tpu.pipeline_mode<synchronous>, transform_indices = @transform_4, window_bounds = array<i64: 128, 128>}, {pipeline_mode = #tpu.pipeline_mode<synchronous>, transform_indices = @transform_5, window_bounds = array<i64: 128, 128>}, {pipeline_mode = #tpu.pipeline_mode<synchronous>, transform_indices = @transform_6, window_bounds = array<i64: 1, 128>}, {transform_indices = @transform_7, window_bounds = array<i64: 384, 128>}]} {
    %c0_i32 = arith.constant 0 : i32
    %0 = arith.cmpi eq, %arg1, %c0_i32 : i32
    %1 = arith.extui %0 : i1 to i32
    %c0_i32_0 = arith.constant 0 : i32
    %2 = arith.cmpi ne, %1, %c0_i32_0 : i32
    scf.if %2 {
      %cst_10 = arith.constant 0.000000e+00 : f32
      %13 = vector.broadcast %cst_10 : f32 to vector<384x128xf32>
      %c0_11 = arith.constant 0 : index
      %c0_12 = arith.constant 0 : index
      %14 = vector.load %arg10[%c0_11, %c0_12] : memref<384x128xf32, #tpu.memory_space<vmem>>, vector<384x128xf32>
      tpu.vector_store %arg10[%c0_11, %c0_12], %13 {strides = array<i32>} : memref<384x128xf32, #tpu.memory_space<vmem>>, vector<384x128xf32>,
      %c0_13 = arith.constant 0 : index
      %c0_14 = arith.constant 0 : index
      %15 = vector.load %arg4[%c0_13, %c0_14] : memref<384x128xbf16, #tpu.memory_space<vmem>>, vector<384x128xbf16>
      %c0_15 = arith.constant 0 : index
      %c0_16 = arith.constant 0 : index
      %16 = vector.load %arg6[%c0_15, %c0_16] : memref<128x128xbf16, #tpu.memory_space<vmem>>, vector<128x128xbf16>
      %cst_17 = arith.constant dense<0.000000e+00> : vector<384x128xf32>
      %17 = tpu.matmul %15, %16, %cst_17 {dimension_numbers = #tpu.dot_dimension_numbers<[1], [0], [0], [1], [0, 0, 1, 1], [], []>} : vector<384x128xbf16>, vector<128x128xbf16>, vector<384x128xf32> -> vector<384x128xf32>
      %c0_18 = arith.constant 0 : index
      %c0_19 = arith.constant 0 : index
      %18 = vector.load %arg11[%c0_18, %c0_19] : memref<384x128xf32, #tpu.memory_space<vmem>>, vector<384x128xf32>
      tpu.vector_store %arg11[%c0_18, %c0_19], %17 {strides = array<i32>} : memref<384x128xf32, #tpu.memory_space<vmem>>, vector<384x128xf32>,
    } else {
    }
    %c0 = arith.constant 0 : index
    %c0_1 = arith.constant 0 : index
    %3 = vector.load %arg2[%c0, %c0_1] : memref<384x384xi8, #tpu.memory_space<vmem>>, vector<384x384xi8>
    %4 = arith.sitofp %3 : vector<384x384xi8> to vector<384x384xbf16>
    %c0_2 = arith.constant 0 : index
    %c0_3 = arith.constant 0 : index
    %5 = vector.load %arg10[%c0_2, %c0_3] : memref<384x128xf32, #tpu.memory_space<vmem>>, vector<384x128xf32>
    %c0_4 = arith.constant 0 : index
    %c0_5 = arith.constant 0 : index
    %6 = vector.load %arg3[%c0_4, %c0_5] : memref<384x128xbf16, #tpu.memory_space<vmem>>, vector<384x128xbf16>
    %cst = arith.constant dense<0.000000e+00> : vector<384x128xf32>
    %7 = tpu.matmul %4, %6, %cst {dimension_numbers = #tpu.dot_dimension_numbers<[1], [0], [0], [1], [0, 0, 1, 1], [], []>} : vector<384x384xbf16>, vector<384x128xbf16>, vector<384x128xf32> -> vector<384x128xf32>
    %8 = arith.addf %5, %7 : vector<384x128xf32>
    %c0_6 = arith.constant 0 : index
    %c0_7 = arith.constant 0 : index
    %9 = vector.load %arg10[%c0_6, %c0_7] : memref<384x128xf32, #tpu.memory_space<vmem>>, vector<384x128xf32>
    tpu.vector_store %arg10[%c0_6, %c0_7], %8 {strides = array<i32>} : memref<384x128xf32, #tpu.memory_space<vmem>>, vector<384x128xf32>,
    %c0_i32_8 = arith.constant 0 : i32
    %10 = arith.cmpi eq, %arg1, %c0_i32_8 : i32
    %11 = arith.extui %10 : i1 to i32
    %c0_i32_9 = arith.constant 0 : i32
    %12 = arith.cmpi ne, %11, %c0_i32_9 : i32
    scf.if %12 {
      %c0_10 = arith.constant 0 : index
      %c0_11 = arith.constant 0 : index
      %13 = vector.load %arg10[%c0_10, %c0_11] : memref<384x128xf32, #tpu.memory_space<vmem>>, vector<384x128xf32>
      %c0_12 = arith.constant 0 : index
      %c0_13 = arith.constant 0 : index
      %14 = vector.load %arg5[%c0_12, %c0_13] : memref<384x1xf32, #tpu.memory_space<vmem>>, vector<384x1xf32>
      %15 = vector.broadcast %14 : vector<384x1xf32> to vector<384x128xf32>
      %16 = arith.mulf %13, %15 : vector<384x128xf32>
      %17 = arith.truncf %16 : vector<384x128xf32> to vector<384x128xbf16>
      %c0_14 = arith.constant 0 : index
      %c0_15 = arith.constant 0 : index
      %18 = vector.load %arg11[%c0_14, %c0_15] : memref<384x128xf32, #tpu.memory_space<vmem>>, vector<384x128xf32>
      %c0_16 = arith.constant 0 : index
      %c0_17 = arith.constant 0 : index
      %19 = vector.load %arg7[%c0_16, %c0_17] : memref<128x128xbf16, #tpu.memory_space<vmem>>, vector<128x128xbf16>
      %cst_18 = arith.constant dense<0.000000e+00> : vector<384x128xf32>
      %20 = tpu.matmul %17, %19, %cst_18 {dimension_numbers = #tpu.dot_dimension_numbers<[1], [0], [0], [1], [0, 0, 1, 1], [], []>} : vector<384x128xbf16>, vector<128x128xbf16>, vector<384x128xf32> -> vector<384x128xf32>
      %21 = arith.addf %18, %20 : vector<384x128xf32>
      %c0_19 = arith.constant 0 : index
      %c0_20 = arith.constant 0 : index
      %22 = vector.load %arg8[%c0_19, %c0_20] : memref<1x128xf32, #tpu.memory_space<vmem>>, vector<1x128xf32>
      %23 = vector.broadcast %22 : vector<1x128xf32> to vector<384x128xf32>
      %24 = arith.addf %21, %23 : vector<384x128xf32>
      %25 = arith.mulf %24, %24 : vector<384x128xf32>
      %cst_21 = arith.constant dense<0.000000e+00> : vector<384xf32>
      %26 = vector.multi_reduction <add>, %25, %cst_21 [1] : vector<384x128xf32> to vector<384xf32>
      %27 = vector.shape_cast %26 : vector<384xf32> to vector<384x1xf32>
      %cst_22 = arith.constant 1.000000e-24 : f32
      %28 = vector.broadcast %cst_22 : f32 to vector<384x1xf32>
      %29 = arith.maximumf %27, %28 : vector<384x1xf32>
      %30 = math.rsqrt %29 : vector<384x1xf32>
      %31 = vector.broadcast %30 : vector<384x1xf32> to vector<384x128xf32>
      %32 = arith.mulf %24, %31 : vector<384x128xf32>
      %cst_23 = arith.constant 0.000000e+00 : f32
      %33 = vector.broadcast %cst_23 : f32 to vector<384x128xf32>
      %34 = arith.maximumf %32, %33 : vector<384x128xf32>
      %35 = arith.truncf %34 : vector<384x128xf32> to vector<384x128xbf16>
      %c0_24 = arith.constant 0 : index
      %c0_25 = arith.constant 0 : index
      %36 = vector.load %arg9[%c0_24, %c0_25] : memref<384x128xbf16, #tpu.memory_space<vmem>>, vector<384x128xbf16>
      tpu.vector_store %arg9[%c0_24, %c0_25], %35 {strides = array<i32>} : memref<384x128xbf16, #tpu.memory_space<vmem>>, vector<384x128xbf16>,
    } else {
    }
    return
  }
  func.func @transform_0(%arg0: i32, %arg1: i32) -> (i32, i32) {
    %c0_i32 = arith.constant 0 : i32
    return %arg0, %arg1 : i32, i32
  }
  func.func @transform_1(%arg0: i32, %arg1: i32) -> (i32, i32) {
    %c0_i32 = arith.constant 0 : i32
    %c0_i32_0 = arith.constant 0 : i32
    return %arg1, %c0_i32 : i32, i32
  }
  func.func @transform_2(%arg0: i32, %arg1: i32) -> (i32, i32) {
    %c0_i32 = arith.constant 0 : i32
    %c0_i32_0 = arith.constant 0 : i32
    return %arg0, %c0_i32 : i32, i32
  }
  func.func @transform_3(%arg0: i32, %arg1: i32) -> (i32, i32) {
    %c0_i32 = arith.constant 0 : i32
    %c0_i32_0 = arith.constant 0 : i32
    return %arg0, %c0_i32 : i32, i32
  }
  func.func @transform_4(%arg0: i32, %arg1: i32) -> (i32, i32) {
    %c0_i32 = arith.constant 0 : i32
    %c0_i32_0 = arith.constant 0 : i32
    %c0_i32_1 = arith.constant 0 : i32
    return %c0_i32, %c0_i32_0 : i32, i32
  }
  func.func @transform_5(%arg0: i32, %arg1: i32) -> (i32, i32) {
    %c0_i32 = arith.constant 0 : i32
    %c0_i32_0 = arith.constant 0 : i32
    %c0_i32_1 = arith.constant 0 : i32
    return %c0_i32, %c0_i32_0 : i32, i32
  }
  func.func @transform_6(%arg0: i32, %arg1: i32) -> (i32, i32) {
    %c0_i32 = arith.constant 0 : i32
    %c0_i32_0 = arith.constant 0 : i32
    %c0_i32_1 = arith.constant 0 : i32
    return %c0_i32, %c0_i32_0 : i32, i32
  }
  func.func @transform_7(%arg0: i32, %arg1: i32) -> (i32, i32) {
    %c0_i32 = arith.constant 0 : i32
    %c0_i32_0 = arith.constant 0 : i32
    return %arg0, %c0_i32 : i32, i32
  }
}

</mosaic_0001>

<bundles_post_ra>
// kernel: tpu_custom_call.1
= control target key start
LH: loop header
LB: loop body
LE: loop exit
PB: predicated region body
PF: predicated region fallthrough
CT: control target
= control target key end

     0   :  { %12 = vsyncpa [#allocation5], 0  ;;  %s4654_s0 = inlined_call_operand.vmem [shape: s8[384,384], index: 0, kind: input, shape index: {}]   ;;  %s4655_s1 = inlined_call_operand.hbm [shape: bf16[384,128], index: 1, kind: input, shape index: {}]   ;;  %s4656_s2 = inlined_call_operand.hbm [shape: bf16[384,128], index: 2, kind: input, shape index: {}]   ;;  %s4657_s3 = inlined_call_operand.vmem [shape: f32[384,1], index: 3, kind: input, shape index: {}]   ;;  %s4658_s4 = inlined_call_operand.vmem [shape: bf16[128,128], index: 4, kind: input, shape index: {}]   ;;  %s4659_s5 = inlined_call_operand.hbm [shape: bf16[128,128], index: 5, kind: input, shape index: {}]   ;;  %s4660_s6 = inlined_call_operand.vmem [shape: f32[1,128], index: 6, kind: input, shape index: {}]   ;;  %s4661_s7 = inlined_call_operand.hbm [shape: bf16[384,128], index: 7, kind: output, shape index: {}]  }
   0x1   :  { %13 = vsyncpa [#allocation8], 0 }
   0x2   :  { %14 = vsyncpa [#allocation6], 0  ;;  %s3852_s24 = smov [#allocation7]   ;;  %s3853_s26 = smov [#allocation4]  }
   0x3   :  { %s34_s25 = sshll.u32 %s3852_s24, 4  ;;  %s22_s27 = sshll.u32 %s3853_s26, 4  ;;  %s35_s25 = int_to_ptr.vmem [resolvable:$true] %s34_s25  ;;  %s23_s27 = int_to_ptr.vmem [resolvable:$true] %s22_s27 }
   0x4   :  { %s3774_s28 = scalar_lea.vmem %s35_s25, 3072  ;;  %p3779_p1 = scmp.lt.s32.totalorder %s35_s25, %s35_s25 }
   0x5   :  { %p3775_p0 = scmp.ne.s32.totalorder %s35_s25, %s3774_s28  ;;  %p3780_p2 = scmp.lt.s32.totalorder %s3774_s28, %s3774_s28 }
   0x7   :  { %p3781_p3 = por %p3780_p2, %p3779_p1 }
   0x9   :  { %p3782_p4 = pnand %p3781_p3, %p3775_p0 }
   0xb   :  { %3785 = shalt.err (!%p3782_p4)
}
   0xc   :  { %s3854_s29 = smov 64   ;;  %s3855_s30 = smov 4  }
   0xd   :  { %40 = dma.hbm_to_vmem [thread:$0]  %s4656_s2, 3072, %s35_s25, [#allocation8], %s3854_s29, %s3854_s29, %s3855_s30  }
   0xe   :  { %s3794_s10 = scalar_lea.vmem %s23_s27, 3072  ;;  %p3799_p6 = scmp.lt.s32.totalorder %s23_s27, %s23_s27 }
   0xf   :  { %p3795_p5 = scmp.ne.s32.totalorder %s23_s27, %s3794_s10  ;;  %p3800_p7 = scmp.lt.s32.totalorder %s3794_s10, %s3794_s10 }
  0x11   :  { %p3801_p8 = por %p3800_p7, %p3799_p6 }
  0x13   :  { %p3802_p9 = pnand %p3801_p8, %p3795_p5 }
  0x15   :  { %3805 = shalt.err (!%p3802_p9)
}
  0x16   :  { %28 = dma.hbm_to_vmem [thread:$0]  %s4655_s1, 3072, %s23_s27, [#allocation5], %s3854_s29, %s3854_s29, %s3855_s30  }
  0x17   :  { %s3856_s13 = smov [#allocation9]  }
  0x18   :  { %s50_s14 = sshll.u32 %s3856_s13, 4  ;;  %s51_s14 = int_to_ptr.vmem [resolvable:$true] %s50_s14 }
  0x19   :  { %s3814_s15 = scalar_lea.vmem %s51_s14, 1024  ;;  %p3819_p11 = scmp.lt.s32.totalorder %s51_s14, %s51_s14 }
  0x1a   :  { %p3815_p10 = scmp.ne.s32.totalorder %s51_s14, %s3814_s15  ;;  %p3820_p12 = scmp.lt.s32.totalorder %s3814_s15, %s3814_s15 }
  0x1c   :  { %p3821_p13 = por %p3820_p12, %p3819_p11 }
  0x1e   :  { %p3822_p0 = pnand %p3821_p13, %p3815_p10 }
  0x20   :  { %3825 = shalt.err (!%p3822_p0)
}
  0x21   :  { %56 = dma.hbm_to_vmem [thread:$0]  %s4659_s5, 1024, %s51_s14, [#allocation8], %s3854_s29, %s3854_s29, %s3855_s30  }
  0x22   :  { %3846 = dma.done.wait [#allocation5], 3072  }
  0x23   :  { %3847 = vsyncadd [#allocation5], 4294964224 }
  0x24   :  { %3848 = dma.done.wait [#allocation8], 4096  }
  0x25   :  { %3849 = vsyncadd [#allocation8], 4294963200  ;;  %v3857_v0 = vmov 0   ;;  %v3606_v1 = vld [vmem:[%s4658_s4 + $0x38] sm:$0xff]   ;;  %v3607_v2 = vld [vmem:[%s4658_s4 + $0x30] sm:$0xff]  }
  0x26   :  { %3604 = vset.pattern.permute.xlu0 %v3857_v0  ;;  %3605 = vset.pattern.permute.xlu1 %v3857_v0  ;;  %v3608_v3 = vld [vmem:[%s4658_s4 + $0x28] sm:$0xff]   ;;  %v3609_v4 = vld [vmem:[%s4658_s4 + $0x20] sm:$0xff]   ;;  %v3610_v6 = vld [vmem:[%s4658_s4 + $0x18] sm:$0xff]  }
  0x27   :  { %3581 = vmatprep.subr.bf16.mxu1 %v3606_v1  ;;  %3389 = vmatprep.subr.bf16.mxu0 %v3606_v1  ;;  %v3614_v5 = vld [vmem:[#allocation7 + $0x40] sm:$0xff]   ;;  %v3611_v7 = vld [vmem:[%s4658_s4 + $0x10] sm:$0xff]   ;;  %v3612_v8 = vld [vmem:[%s4658_s4 + $0x8] sm:$0xff]  }
  0x28   :  { %3589 = vmatpush3.bf16.msra.mxu1 %v3606_v1  ;;  %3390 = vmatpush3.bf16.msra.mxu0 %v3606_v1  ;;  %v3629_v9 = vld [vmem:[#allocation7] sm:$0xff]   ;;  %v3615_v11 = vld [vmem:[#allocation7 + $0x48] sm:$0xff]   ;;  %v3632_v12 = vld [vmem:[#allocation4 + $0xb8] sm:$0xff]  }
  0x29   :  { %3582 = vmatprep.subr.bf16.mxu1 %v3607_v2  ;;  %3391 = vmatprep.subr.bf16.mxu0 %v3607_v2  ;;  %v3613_v10 = vld [vmem:[%s4658_s4] sm:$0xff]   ;;  %v3616_v13 = vld [vmem:[#allocation4 + $0x38] sm:$0xff]   ;;  %v3631_v14 = vld [vmem:[#allocation7 + $0x8] sm:$0xff]  }
  0x2a   :  { %3421 = vmatprep.mubr.bf16.mxu1 %v3614_v5  ;;  %3405 = vmatprep.mubr.bf16.mxu0 %v3629_v9  ;;  %v3618_v15 = vld [vmem:[#allocation7 + $0x50] sm:$0xff]   ;;  %v3619_v19 = vld [vmem:[#allocation7 + $0x58] sm:$0xff]   ;;  %v3620_v20 = vld [vmem:[#allocation4 + $0x28] sm:$0xff]  }
  0x2b   :  { %v3636_v16 = vld [vmem:[#allocation4 + $0xb0] sm:$0xff]   ;;  %v3640_v21 = vld [vmem:[#allocation4 + $0xa8] sm:$0xff]   ;;  %v3639_v22 = vld [vmem:[#allocation7 + $0x18] sm:$0xff]  }
  0x2c   :  { %3590 = vmatpush3.bf16.msra.mxu1 %v3607_v2  ;;  %3392 = vmatpush3.bf16.msra.mxu0 %v3607_v2  ;;  %v3637_v17 = vld [vmem:[#allocation7 + $0x10] sm:$0xff]   ;;  %v3622_v23 = vld [vmem:[#allocation7 + $0x60] sm:$0xff]   ;;  %v3623_v27 = vld [vmem:[#allocation7 + $0x68] sm:$0xff]  }
  0x2d   :  { %3583 = vmatprep.subr.bf16.mxu1 %v3608_v3  ;;  %3393 = vmatprep.subr.bf16.mxu0 %v3608_v3  ;;  %v3617_v18 = vld [vmem:[#allocation4 + $0x30] sm:$0xff]   ;;  %v3644_v24 = vld [vmem:[#allocation4 + $0xa0] sm:$0xff]   ;;  %v3624_v28 = vld [vmem:[#allocation4 + $0x18] sm:$0xff]  }
  0x2e   :  { %v3645_v25 = vld [vmem:[#allocation7 + $0x20] sm:$0xff]   ;;  %v3648_v29 = vld [vmem:[#allocation4 + $0x98] sm:$0xff]   ;;  %v3647_v30 = vld [vmem:[#allocation7 + $0x28] sm:$0xff]  }
  0x2f   :  { %v3621_v26 = vld [vmem:[#allocation4 + $0x20] sm:$0xff]   ;;  %v3626_v31 = vld [vmem:[#allocation7 + $0x70] sm:$0xff]   ;;  %v3627_v35 = vld [vmem:[#allocation7 + $0x78] sm:$0xff]  }
  0x30   :  { %3591 = vmatpush3.bf16.msra.mxu1 %v3608_v3  ;;  %3394 = vmatpush3.bf16.msra.mxu0 %v3608_v3  ;;  %v3652_v32 = vld [vmem:[#allocation4 + $0x90] sm:$0xff]   ;;  %v3628_v36 = vld [vmem:[#allocation4 + $0x8] sm:$0xff]   ;;  %v3655_v38 = vld [vmem:[#allocation7 + $0x38] sm:$0xff]  }
  0x31   :  { %3584 = vmatprep.subr.bf16.mxu1 %v3609_v4  ;;  %3395 = vmatprep.subr.bf16.mxu0 %v3609_v4  ;;  %v3653_v33 = vld [vmem:[#allocation7 + $0x30] sm:$0xff]   ;;  %v3656_v37 = vld [vmem:[#allocation4 + $0x88] sm:$0xff]   ;;  %v3633_v39 = vld [vmem:[#allocation7 + $0x80] sm:$0xff]  }
  0x32   :  { %v3625_v34 = vld [vmem:[#allocation4 + $0x10] sm:$0xff]   ;;  %v3660_v41 = vld [vmem:[#allocation4 + $0x80] sm:$0xff]   ;;  %v3634_v46 = vld [vmem:[#allocation7 + $0x88] sm:$0xff]  }
  0x33   :  { %v652_v40 = vld [vmem:[%s4654_s0 + $0x10] sm:$0xff]  ;;  %v3630_v43 = vld [vmem:[#allocation4] sm:$0xff]   ;;  %v655_v47 = vld [vmem:[%s4654_s0 + $0x28] sm:$0xff] }
  0x34   :  { %3592 = vmatpush3.bf16.msra.mxu1 %v3609_v4  ;;  %3396 = vmatpush3.bf16.msra.mxu0 %v3609_v4  ;;  %v688_v42 = vunpack.c.l.s8.bf16 %v652_v40  ;;  %v1595_v44 = vld [vmem:[%s4657_s3] sm:$0xff]  ;;  %v1597_v45 = vld [vmem:[%s4657_s3 + $0x10] sm:$0xff]  ;;  %v3635_v48 = vld [vmem:[#allocation4 + $0x78] sm:$0xff]   ;;  %v691_v51 = vunpack.c.h.s8.bf16 %v652_v40  ;;  %v694_v52 = vunpack.c.l.s8.bf16 %v655_v47  ;;  %v697_v62 = vunpack.c.h.s8.bf16 %v655_v47 }
  0x35   :  { %3585 = vmatprep.subr.bf16.mxu1 %v3610_v6  ;;  %3397 = vmatprep.subr.bf16.mxu0 %v3610_v6  ;;  %v3641_v49 = vld [vmem:[#allocation7 + $0x90] sm:$0xff]   ;;  %v1596_v50 = vld [vmem:[%s4657_s3 + $0x8] sm:$0xff]  ;;  %v1598_v53 = vld [vmem:[%s4657_s3 + $0x18] sm:$0xff] }
  0x36   :  { %1645 = vperm.xlu0 %3604, %v1595_v44   ;;  %1655 = vperm.xlu1 %3605, %v1597_v45   ;;  %v3638_v54 = vld [vmem:[#allocation4 + $0x70] sm:$0xff]   ;;  %v1599_v55 = vld [vmem:[%s4657_s3 + $0x20] sm:$0xff]  ;;  %v3642_v56 = vld [vmem:[#allocation7 + $0x98] sm:$0xff]  }
  0x37   :  { %v658_v57 = vld [vmem:[%s4654_s0 + $0x40] sm:$0xff]  ;;  %v1600_v58 = vld [vmem:[%s4657_s3 + $0x28] sm:$0xff]  ;;  %v1601_v61 = vld [vmem:[%s4657_s3 + $0x30] sm:$0xff] }
  0x38   :  { %3593 = vmatpush3.bf16.msra.mxu1 %v3610_v6  ;;  %3398 = vmatpush3.bf16.msra.mxu0 %v3610_v6  ;;  %v3643_v59 = vld [vmem:[#allocation4 + $0x68] sm:$0xff]   ;;  %v3649_v60 = vld [vmem:[#allocation7 + $0xa0] sm:$0xff]   ;;  %v700_v63 = vunpack.c.l.s8.bf16 %v658_v57  ;;  %v1602_v1 = vld [vmem:[%s4657_s3 + $0x38] sm:$0xff] }
  0x39   :  { %3586 = vmatprep.subr.bf16.mxu1 %v3611_v7  ;;  %3399 = vmatprep.subr.bf16.mxu0 %v3611_v7  ;;  %v3646_v2 = vld [vmem:[#allocation4 + $0x60] sm:$0xff]   ;;  %v3650_v4 = vld [vmem:[#allocation7 + $0xa8] sm:$0xff]   ;;  %v661_v5 = vld [vmem:[%s4654_s0 + $0x58] sm:$0xff] }
  0x3a   :  { %1650 = vperm.xlu0 %3604, %v1596_v50   ;;  %1660 = vperm.xlu1 %3605, %v1598_v53   ;;  %v1603_v3 = vld [vmem:[%s4657_s3 + $0x40] sm:$0xff]  ;;  %v1604_v6 = vld [vmem:[%s4657_s3 + $0x48] sm:$0xff]  ;;  %v1605_v9 = vld [vmem:[%s4657_s3 + $0x50] sm:$0xff] }
  0x3b   :  { %v1618_v44 = vld [vmem:[%s4657_s3 + $0xb8] sm:$0xff] }
  0x3c   :  { %3594 = vmatpush3.bf16.msra.mxu1 %v3611_v7  ;;  %3400 = vmatpush3.bf16.msra.mxu0 %v3611_v7  ;;  %v3651_v7 = vld [vmem:[#allocation4 + $0x58] sm:$0xff]  }
  0x3d   :  { %3587 = vmatprep.subr.bf16.mxu1 %v3612_v8  ;;  %3401 = vmatprep.subr.bf16.mxu0 %v3612_v8  ;;  %v653_v45 = vld [vmem:[%s4654_s0 + $0x18] sm:$0xff] }
  0x3e   :  { %1665 = vperm.xlu0 %3604, %v1599_v55   ;;  %1670 = vperm.xlu1 %3605, %v1600_v58   ;;  %v692_v47 = vunpack.c.l.s8.bf16 %v653_v45  ;;  %v1623_v55 = vld [vmem:[%s4657_s3 + $0xe0] sm:$0xff]  ;;  %v676_v58 = vld [vmem:[%s4654_s0 + $0xd0] sm:$0xff] }
  0x40   :  { %3595 = vmatpush3.bf16.msra.mxu1 %v3612_v8  ;;  %3402 = vmatpush3.bf16.msra.mxu0 %v3612_v8  ;;  %v3657_v8 = vld [vmem:[#allocation7 + $0xb0] sm:$0xff]  }
  0x41   :  { %3588 = vmatprep.subr.bf16.mxu1 %v3613_v10  ;;  %3403 = vmatprep.subr.bf16.mxu0 %v3613_v10 }
  0x42   :  { %1675 = vperm.xlu0 %3604, %v1601_v61   ;;  %1680 = vperm.xlu1 %3605, %v1602_v1   ;;  %v1625_v61 = vld [vmem:[%s4657_s3 + $0xf0] sm:$0xff]  ;;  %v1626_v1 = vld [vmem:[%s4657_s3 + $0xf8] sm:$0xff] }
  0x44   :  { %3596 = vmatpush3.bf16.msra.mxu1 %v3613_v10  ;;  %3404 = vmatpush3.bf16.msra.mxu0 %v3613_v10  ;;  %v703_v10 = vunpack.c.h.s8.bf16 %v658_v57  ;;  %v695_v57 = vunpack.c.h.s8.bf16 %v653_v45  ;;  %v3665_v45 = vld [vmem:[#allocation9 + $0x20] sm:$0xff]  }
  0x45   :  { %998 = vmatprep.subr.bf16.mxu1 %v3857_v0  ;;  %3453 = vmatprep.subr.bf16.mxu0 %v3632_v12 }
  0x46   :  { %1685 = vperm.xlu0 %3604, %v1603_v3   ;;  %1690 = vperm.xlu1 %3605, %v1604_v6   ;;  %v1627_v3 = vld [vmem:[%s4657_s3 + $0x100] sm:$0xff]  ;;  %v679_v6 = vld [vmem:[%s4654_s0 + $0xe8] sm:$0xff] }
  0x47   :  { %3422 = vmatmul.mubr.bf16.vlgmr.msra.gmra.mxu1 %v3615_v11  ;;  %3406 = vmatmul.mubr.bf16.vlgmr.msra.gmra.mxu0 %v3631_v14  ;;  %v706_v11 = vunpack.c.l.s8.bf16 %v661_v5  ;;  %v1607_v14 = vld [vmem:[%s4657_s3 + $0x60] sm:$0xff] }
  0x48   :  { %999 = vmatpush1.bf16.msra.mxu1 %v3616_v13  ;;  %3425 = vmatprep.mubr.bf16.mxu1 %v3618_v15  ;;  %v3654_v13 = vld [vmem:[#allocation4 + $0x50] sm:$0xff]   ;;  %v651_v15 = vld [vmem:[%s4654_s0 + $0x8] sm:$0xff] }
  0x49   :  { %1000 = vmatprep.subr.bf16.mxu1 %v3857_v0  ;;  %3454 = vmatpush3.bf16.msra.mxu0 %v3632_v12  ;;  %v1606_v12 = vld [vmem:[%s4657_s3 + $0x58] sm:$0xff] }
  0x4a   :  { %3455 = vmatprep.subr.bf16.mxu0 %v3636_v16  ;;  %3409 = vmatprep.mubr.bf16.mxu0 %v3637_v17  ;;  %v664_v17 = vld [vmem:[%s4654_s0 + $0x70] sm:$0xff] }
  0x4b   :  { %1695 = vperm.xlu0 %3604, %v1605_v9   ;;  %1700 = vperm.xlu1 %3605, %v1606_v12   ;;  %v739_v9 = vunpack.c.h.s8.bf16 %v676_v58  ;;  %v1631_v12 = vld [vmem:[%s4657_s3 + $0x120] sm:$0xff] }
  0x4c   :  { %1001 = vmatpush1.bf16.msra.mxu1 %v3617_v18  ;;  %v1608_v18 = vld [vmem:[%s4657_s3 + $0x68] sm:$0xff] }
  0x4d   :  { %1002 = vmatprep.subr.bf16.mxu1 %v3857_v0  ;;  %3456 = vmatpush3.bf16.msra.mxu0 %v3636_v16  ;;  %v3658_v16 = vld [vmem:[#allocation7 + $0xb8] sm:$0xff]  }
  0x4e   :  { %3457 = vmatprep.subr.bf16.mxu0 %v3640_v21 }
  0x4f   :  { %3426 = vmatmul.mubr.bf16.gmra.mxu1 %v3619_v19  ;;  %3410 = vmatmul.mubr.bf16.gmra.mxu0 %v3639_v22  ;;  %v3659_v19 = vld [vmem:[#allocation4 + $0x48] sm:$0xff]   ;;  %v709_v22 = vunpack.c.h.s8.bf16 %v661_v5 }
  0x50   :  { %1003 = vmatpush1.bf16.msra.mxu1 %v3620_v20  ;;  %3429 = vmatprep.mubr.bf16.mxu1 %v3622_v23  ;;  %v687_v20 = vunpack.c.l.s8.bf16 %v651_v15  ;;  %v712_v23 = vunpack.c.l.s8.bf16 %v664_v17  ;;  %v1628_v5 = vld [vmem:[%s4657_s3 + $0x108] sm:$0xff] }
  0x51   :  { %1004 = vmatprep.subr.bf16.mxu1 %v3857_v0  ;;  %3458 = vmatpush3.bf16.msra.mxu0 %v3640_v21  ;;  %v1609_v21 = vld [vmem:[%s4657_s3 + $0x70] sm:$0xff] }
  0x52   :  { %3459 = vmatprep.subr.bf16.mxu0 %v3644_v24  ;;  %3413 = vmatprep.mubr.bf16.mxu0 %v3645_v25  ;;  %v3661_v25 = vld [vmem:[#allocation4 + $0x40] sm:$0xff]  }
  0x53   :  { %1705 = vperm.xlu0 %3604, %v1607_v14   ;;  %1710 = vperm.xlu1 %3605, %v1608_v18   ;;  %v1633_v18 = vld [vmem:[%s4657_s3 + $0x130] sm:$0xff] }
  0x54   :  { %1005 = vmatpush1.bf16.msra.mxu1 %v3621_v26  ;;  %v650_v26 = vld [vmem:[%s4654_s0] sm:$0xff] }
  0x55   :  { %1006 = vmatprep.subr.bf16.mxu1 %v3857_v0  ;;  %3460 = vmatpush3.bf16.msra.mxu0 %v3644_v24  ;;  %v1610_v24 = vld [vmem:[%s4657_s3 + $0x78] sm:$0xff] }
  0x56   :  { %3461 = vmatprep.subr.bf16.mxu0 %v3648_v29 }
  0x57   :  { %3430 = vmatmul.mubr.bf16.gmra.mxu1 %v3623_v27  ;;  %3414 = vmatmul.mubr.bf16.gmra.mxu0 %v3647_v30  ;;  %v1611_v27 = vld [vmem:[%s4657_s3 + $0x80] sm:$0xff]  ;;  %v1612_v30 = vld [vmem:[%s4657_s3 + $0x88] sm:$0xff] }
  0x58   :  { %1007 = vmatpush1.bf16.msra.mxu1 %v3624_v28  ;;  %3433 = vmatprep.mubr.bf16.mxu1 %v3626_v31  ;;  %v686_v28 = vunpack.c.l.s8.bf16 %v650_v26  ;;  %v690_v31 = vunpack.c.h.s8.bf16 %v651_v15  ;;  %v1632_v15 = vld [vmem:[%s4657_s3 + $0x128] sm:$0xff] }
  0x59   :  { %1008 = vmatprep.subr.bf16.mxu1 %v3857_v0  ;;  %3462 = vmatpush3.bf16.msra.mxu0 %v3648_v29  ;;  %v667_v29 = vld [vmem:[%s4654_s0 + $0x88] sm:$0xff] }
  0x5a   :  { %3463 = vmatprep.subr.bf16.mxu0 %v3652_v32  ;;  %3417 = vmatprep.mubr.bf16.mxu0 %v3653_v33  ;;  %v718_v33 = vunpack.c.l.s8.bf16 %v667_v29 }
  0x5b   :  { %1715 = vperm.xlu0 %3604, %v1609_v21   ;;  %1720 = vperm.xlu1 %3605, %v1610_v24   ;;  %v1634_v21 = vld [vmem:[%s4657_s3 + $0x138] sm:$0xff] }
  0x5c   :  { %1009 = vmatpush1.bf16.msra.mxu1 %v3625_v34  ;;  %v1614_v34 = vld [vmem:[%s4657_s3 + $0x98] sm:$0xff] }
  0x5d   :  { %1010 = vmatprep.subr.bf16.mxu1 %v3857_v0  ;;  %3464 = vmatpush3.bf16.msra.mxu0 %v3652_v32  ;;  %v1613_v32 = vld [vmem:[%s4657_s3 + $0x90] sm:$0xff] }
  0x5e   :  { %3465 = vmatprep.subr.bf16.mxu0 %v3656_v37 }
  0x5f   :  { %3434 = vmatmul.mubr.bf16.gmra.mxu1 %v3627_v35  ;;  %3418 = vmatmul.mubr.bf16.gmra.mxu0 %v3655_v38  ;;  %v1615_v35 = vld [vmem:[%s4657_s3 + $0xa0] sm:$0xff] }
  0x60   :  { %1011 = vmatpush1.bf16.msra.mxu1 %v3628_v36  ;;  %3437 = vmatprep.mubr.bf16.mxu1 %v3633_v39  ;;  %v654_v36 = vld [vmem:[%s4654_s0 + $0x20] sm:$0xff]  ;;  %v1616_v39 = vld [vmem:[%s4657_s3 + $0xa8] sm:$0xff] }
  0x61   :  { %1012 = vmatprep.subr.bf16.mxu1 %v3857_v0  ;;  %3466 = vmatpush3.bf16.msra.mxu0 %v3656_v37  ;;  %v689_v37 = vunpack.c.h.s8.bf16 %v650_v26  ;;  %v670_v38 = vld [vmem:[%s4654_s0 + $0xa0] sm:$0xff]  ;;  %v693_v40 = vunpack.c.l.s8.bf16 %v654_v36  ;;  %v696_v50 = vunpack.c.h.s8.bf16 %v654_v36  ;;  %v685_v26 = vld [vmem:[%s4654_s0 + $0x118] sm:$0xff] }
  0x62   :  { %3467 = vmatprep.subr.bf16.mxu0 %v3660_v41  ;;  %3469 = vmatprep.mubr.bf16.mxu0 %v688_v42  ;;  %v721_v42 = vunpack.c.h.s8.bf16 %v667_v29 }
  0x63   :  { %1725 = vperm.xlu0 %3604, %v1611_v27   ;;  %1730 = vperm.xlu1 %3605, %v1612_v30   ;;  %v754_v30 = vunpack.c.l.s8.bf16 %v685_v26 }
  0x64   :  { %1013 = vmatpush1.bf16.msra.mxu1 %v3630_v43  ;;  %v724_v43 = vunpack.c.l.s8.bf16 %v670_v38 }
  0x65   :  { %1014 = vmatprep.subr.bf16.mxu1 %v3857_v0  ;;  %3468 = vmatpush3.bf16.msra.mxu0 %v3660_v41  ;;  %v1617_v41 = vld [vmem:[%s4657_s3 + $0xb0] sm:$0xff] }
  0x67   :  { %3438 = vmatmul.mubr.bf16.gmra.mxu1 %v3634_v46  ;;  %1735 = vperm.xlu0 %3604, %v1613_v32   ;;  %v1619_v46 = vld [vmem:[%s4657_s3 + $0xc0] sm:$0xff] }
  0x68   :  { %1015 = vmatpush2.bf16.msra.mxu1 %v3635_v48  ;;  %3441 = vmatprep.mubr.bf16.mxu1 %v3641_v49  ;;  %v673_v48 = vld [vmem:[%s4654_s0 + $0xb8] sm:$0xff]  ;;  %v1620_v49 = vld [vmem:[%s4657_s3 + $0xc8] sm:$0xff]  ;;  %v1639_v32 = vld [vmem:[%s4657_s3 + $0x160] sm:$0xff] }
  0x69   :  { %1016 = vmatprep.subr.bf16.mxu1 %v3857_v0  ;;  %3470 = vmatmul.mubr.bf16.vlgmr.msra.gmra.mxu0 %v691_v51  ;;  %v1621_v51 = vld [vmem:[%s4657_s3 + $0xd0] sm:$0xff]  ;;  %v730_v53 = vunpack.c.l.s8.bf16 %v673_v48 }
  0x6a   :  { %3473 = vmatprep.mubr.bf16.mxu0 %v694_v52  ;;  %1740 = vperm.xlu1 %3605, %v1614_v34   ;;  %v727_v52 = vunpack.c.h.s8.bf16 %v670_v38  ;;  %v3663_v38 = vld [vmem:[#allocation9 + $0x30] sm:$0xff]  }
  0x6b   :  { %1745 = vperm.xlu0 %3604, %v1615_v35   ;;  %v1640_v35 = vld [vmem:[%s4657_s3 + $0x168] sm:$0xff] }
  0x6c   :  { %1017 = vmatpush2.bf16.msra.mxu1 %v3638_v54  ;;  %v1622_v54 = vld [vmem:[%s4657_s3 + $0xd8] sm:$0xff] }
  0x6d   :  { %1018 = vmatprep.subr.bf16.mxu1 %v3857_v0 }
  0x6e   :  { %1750 = vperm.xlu1 %3605, %v1616_v39   ;;  %v757_v39 = vunpack.c.h.s8.bf16 %v685_v26 }
  0x6f   :  { %3442 = vmatmul.mubr.bf16.gmra.mxu1 %v3642_v56  ;;  %1755 = vperm.xlu0 %3604, %v1617_v41   ;;  %v657_v56 = vld [vmem:[%s4654_s0 + $0x38] sm:$0xff]  ;;  %v662_v41 = vld [vmem:[%s4654_s0 + $0x60] sm:$0xff] }
  0x70   :  { %1019 = vmatpush2.bf16.msra.mxu1 %v3643_v59  ;;  %3445 = vmatprep.mubr.bf16.mxu1 %v3649_v60  ;;  %v1624_v59 = vld [vmem:[%s4657_s3 + $0xe8] sm:$0xff]  ;;  %v699_v60 = vunpack.c.l.s8.bf16 %v657_v56 }
  0x71   :  { %1020 = vmatprep.subr.bf16.mxu1 %v3857_v0  ;;  %3474 = vmatmul.mubr.bf16.gmra.mxu0 %v697_v62  ;;  %v733_v62 = vunpack.c.h.s8.bf16 %v673_v48  ;;  %v713_v48 = vunpack.c.h.s8.bf16 %v662_v41 }
  0x72   :  { %3477 = vmatprep.mubr.bf16.mxu0 %v700_v63  ;;  %1760 = vperm.xlu1 %3605, %v1618_v44   ;;  %v736_v63 = vunpack.c.l.s8.bf16 %v676_v58 }
  0x73   :  { %1765 = vperm.xlu0 %3604, %v1619_v46   ;;  %v3666_v46 = vld [vmem:[#allocation9 + $0x18] sm:$0xff]  }
  0x74   :  { %1021 = vmatpush2.bf16.msra.mxu1 %v3646_v2  ;;  %v656_v2 = vld [vmem:[%s4654_s0 + $0x30] sm:$0xff] }
  0x75   :  { %1022 = vmatprep.subr.bf16.mxu1 %v3857_v0  ;;  %v701_v14 = vunpack.c.h.s8.bf16 %v656_v2 }
  0x76   :  { %1770 = vperm.xlu1 %3605, %v1620_v49  }
  0x77   :  { %3446 = vmatmul.mubr.bf16.gmra.mxu1 %v3650_v4  ;;  %1775 = vperm.xlu0 %3604, %v1621_v51   ;;  %v698_v4 = vunpack.c.l.s8.bf16 %v656_v2  ;;  %v665_v51 = vld [vmem:[%s4654_s0 + $0x78] sm:$0xff]  ;;  %v671_v2 = vld [vmem:[%s4654_s0 + $0xa8] sm:$0xff] }
  0x78   :  { %1023 = vmatpush2.bf16.msra.mxu1 %v3651_v7  ;;  %3449 = vmatprep.mubr.bf16.mxu1 %v3657_v8  ;;  %v702_v7 = vunpack.c.h.s8.bf16 %v657_v56  ;;  %v1629_v8 = vld [vmem:[%s4657_s3 + $0x110] sm:$0xff]  ;;  %v669_v56 = vld [vmem:[%s4654_s0 + $0x98] sm:$0xff] }
  0x79   :  { %1024 = vmatprep.subr.bf16.mxu1 %v3857_v0  ;;  %3478 = vmatmul.mubr.bf16.gmra.mxu0 %v703_v10  ;;  %v742_v10 = vunpack.c.l.s8.bf16 %v679_v6  ;;  %v723_v58 = vunpack.c.l.s8.bf16 %v669_v56 }
  0x7a   :  { %3481 = vmatprep.mubr.bf16.mxu0 %v706_v11  ;;  %1780 = vperm.xlu1 %3605, %v1622_v54   ;;  %v1630_v11 = vld [vmem:[%s4657_s3 + $0x118] sm:$0xff] }
  0x7b   :  { %1785 = vperm.xlu0 %3604, %v1623_v55   ;;  %v3669_v55 = vld [vmem:[#allocation9] sm:$0xff]  }
  0x7c   :  { %1025 = vmatpush2.bf16.msra.mxu1 %v3654_v13  ;;  %v660_v13 = vld [vmem:[%s4654_s0 + $0x50] sm:$0xff] }
  0x7d   :  { %1026 = vmatprep.subr.bf16.mxu1 %v3857_v0  ;;  %v708_v27 = vunpack.c.h.s8.bf16 %v660_v13 }
  0x7e   :  { %1790 = vperm.xlu1 %3605, %v1624_v59   ;;  %v668_v59 = vld [vmem:[%s4654_s0 + $0x90] sm:$0xff] }
  0x7f   :  { %3450 = vmatmul.mubr.bf16.gmra.mxu1 %v3658_v16  ;;  %1795 = vperm.xlu0 %3604, %v1625_v61   ;;  %v682_v16 = vld [vmem:[%s4654_s0 + $0x100] sm:$0xff]  ;;  %v726_v61 = vunpack.c.h.s8.bf16 %v669_v56 }
  0x80   :  { %1027 = vmatpush2.bf16.msra.mxu1 %v3659_v19  ;;  %1030 = vmatprep.mubr.bf16.mxu1 %v687_v20  ;;  %v745_v19 = vunpack.c.h.s8.bf16 %v679_v6  ;;  %v748_v20 = vunpack.c.l.s8.bf16 %v682_v16  ;;  %v751_v29 = vunpack.c.h.s8.bf16 %v682_v16  ;;  %v731_v6 = vunpack.c.h.s8.bf16 %v671_v2 }
  0x81   :  { %1028 = vmatprep.subr.bf16.mxu1 %v3857_v0  ;;  %3482 = vmatmul.mubr.bf16.gmra.mxu0 %v709_v22  ;;  %v715_v0 = vunpack.c.h.s8.bf16 %v664_v17  ;;  %v705_v17 = vunpack.c.l.s8.bf16 %v660_v13  ;;  %v659_v22 = vld [vmem:[%s4654_s0 + $0x48] sm:$0xff] }
  0x82   :  { %3485 = vmatprep.mubr.bf16.mxu0 %v712_v23  ;;  %1800 = vperm.xlu1 %3605, %v1626_v1   ;;  %v1635_v23 = vld [vmem:[%s4657_s3 + $0x140] sm:$0xff]  ;;  %v704_v24 = vunpack.c.l.s8.bf16 %v659_v22  ;;  %v707_v34 = vunpack.c.h.s8.bf16 %v659_v22 }
  0x83   :  { %1805 = vperm.xlu0 %3604, %v1627_v3   ;;  %v728_v3 = vunpack.c.l.s8.bf16 %v671_v2 }
  0x84   :  { %1029 = vmatpush2.bf16.msra.mxu1 %v3661_v25  ;;  %v1636_v25 = vld [vmem:[%s4657_s3 + $0x148] sm:$0xff] }
  0x86   :  { %1810 = vperm.xlu1 %3605, %v1628_v5   ;;  %v675_v5 = vld [vmem:[%s4654_s0 + $0xc8] sm:$0xff] }
  0x87   :  { %1031 = vmatmul.mubr.bf16.vlgmr.msra.gmra.mxu1 %v686_v28  ;;  %1815 = vperm.xlu0 %3604, %v1629_v8   ;;  %v1637_v28 = vld [vmem:[%s4657_s3 + $0x150] sm:$0xff]  ;;  %v674_v8 = vld [vmem:[%s4654_s0 + $0xc0] sm:$0xff] }
  0x88   :  { %1038 = vmatprep.mubr.bf16.mxu1 %v690_v31  ;;  %v1638_v31 = vld [vmem:[%s4657_s3 + $0x158] sm:$0xff] }
  0x89   :  { %3486 = vmatmul.mubr.bf16.gmra.mxu0 %v715_v0  ;;  %v3662_v0 = vld [vmem:[#allocation9 + $0x38] sm:$0xff]  }
  0x8a   :  { %3489 = vmatprep.mubr.bf16.mxu0 %v718_v33  ;;  %1820 = vperm.xlu1 %3605, %v1630_v11   ;;  %v663_v33 = vld [vmem:[%s4654_s0 + $0x68] sm:$0xff] }
  0x8b   :  { %1825 = vperm.xlu0 %3604, %v1631_v12   ;;  %3517 = vmatprep.subr.bf16.mxu0 %v3662_v0  ;;  %v711_v36 = vunpack.c.l.s8.bf16 %v663_v33  ;;  %v714_v44 = vunpack.c.h.s8.bf16 %v663_v33  ;;  %v681_v33 = vld [vmem:[%s4654_s0 + $0xf8] sm:$0xff] }
  0x8c   :  { %3518 = vmatpush3.bf16.msra.mxu0 %v3662_v0 }
  0x8d   :  { %3519 = vmatprep.subr.bf16.mxu0 %v3663_v38 }
  0x8e   :  { %1830 = vperm.xlu1 %3605, %v1632_v15  }
  0x8f   :  { %1039 = vmatmul.mubr.bf16.gmra.mxu1 %v689_v37  ;;  %1835 = vperm.xlu0 %3604, %v1633_v18   ;;  %v1641_v37 = vld [vmem:[%s4657_s3 + $0x170] sm:$0xff] }
  0x90   :  { %1046 = vmatprep.mubr.bf16.mxu1 %v693_v40  ;;  %v1642_v40 = vld [vmem:[%s4657_s3 + $0x178] sm:$0xff]  ;;  %3520 = vmatpush3.bf16.msra.mxu0 %v3663_v38 }
  0x91   :  { %3490 = vmatmul.mubr.bf16.gmra.mxu0 %v721_v42  ;;  %v3664_v42 = vld [vmem:[#allocation9 + $0x28] sm:$0xff]  }
  0x92   :  { %3493 = vmatprep.mubr.bf16.mxu0 %v724_v43  ;;  %1840 = vperm.xlu1 %3605, %v1634_v21   ;;  %v710_v43 = vunpack.c.l.s8.bf16 %v662_v41  ;;  %v680_v41 = vld [vmem:[%s4654_s0 + $0xf0] sm:$0xff] }
  0x93   :  { %1845 = vperm.xlu0 %3604, %v1635_v23   ;;  %3521 = vmatprep.subr.bf16.mxu0 %v3664_v42 }
  0x94   :  { %3522 = vmatpush3.bf16.msra.mxu0 %v3664_v42 }
  0x95   :  { %3523 = vmatprep.subr.bf16.mxu0 %v3665_v45 }
  0x96   :  { %1850 = vperm.xlu1 %3605, %v1636_v25  }
  0x97   :  { %1047 = vmatmul.mubr.bf16.gmra.mxu1 %v692_v47  ;;  %1855 = vperm.xlu0 %3604, %v1637_v28   ;;  %v666_v47 = vld [vmem:[%s4654_s0 + $0x80] sm:$0xff] }
  0x98   :  { %1054 = vmatprep.mubr.bf16.mxu1 %v696_v50  ;;  %3524 = vmatpush3.bf16.msra.mxu0 %v3665_v45  ;;  %v717_v49 = vunpack.c.l.s8.bf16 %v666_v47  ;;  %v3667_v50 = vld [vmem:[#allocation9 + $0x10] sm:$0xff]   ;;  %v720_v54 = vunpack.c.h.s8.bf16 %v666_v47  ;;  %v746_v45 = vunpack.c.l.s8.bf16 %v680_v41 }
  0x99   :  { %3494 = vmatmul.mubr.bf16.gmra.mxu0 %v727_v52  ;;  %3525 = vmatprep.subr.bf16.mxu0 %v3666_v46  ;;  %v3668_v52 = vld [vmem:[#allocation9 + $0x8] sm:$0xff]  }
  0x9a   :  { %3497 = vmatprep.mubr.bf16.mxu0 %v730_v53  ;;  %1860 = vperm.xlu1 %3605, %v1638_v31   ;;  %v716_v53 = vunpack.c.l.s8.bf16 %v665_v51 }
  0x9b   :  { %1865 = vperm.xlu0 %3604, %v1639_v32  }
  0x9c   :  { %3526 = vmatpush3.bf16.msra.mxu0 %v3666_v46  ;;  %v750_v46 = vunpack.c.h.s8.bf16 %v681_v33 }
  0x9d   :  { %3527 = vmatprep.subr.bf16.mxu0 %v3667_v50 }
  0x9e   :  { %1870 = vperm.xlu1 %3605, %v1640_v35  }
  0x9f   :  { %1055 = vmatmul.mubr.bf16.gmra.mxu1 %v695_v57  ;;  %1875 = vperm.xlu0 %3604, %v1641_v37   ;;  %v719_v57 = vunpack.c.h.s8.bf16 %v665_v51  ;;  %v747_v37 = vunpack.c.l.s8.bf16 %v681_v33  ;;  %v684_v51 = vld [vmem:[%s4654_s0 + $0x110] sm:$0xff] }
  0xa0   :  { %1062 = vmatprep.mubr.bf16.mxu1 %v699_v60  ;;  %3528 = vmatpush3.bf16.msra.mxu0 %v3667_v50  ;;  %v722_v60 = vunpack.c.l.s8.bf16 %v668_v59 }
  0xa1   :  { %3498 = vmatmul.mubr.bf16.gmra.mxu0 %v733_v62  ;;  %3529 = vmatprep.subr.bf16.mxu0 %v3668_v52  ;;  %v672_v62 = vld [vmem:[%s4654_s0 + $0xb0] sm:$0xff] }
  0xa2   :  { %3501 = vmatprep.mubr.bf16.mxu0 %v736_v63  ;;  %1880 = vperm.xlu1 %3605, %v1642_v40   ;;  %v725_v63 = vunpack.c.h.s8.bf16 %v668_v59  ;;  %v729_v1 = vunpack.c.l.s8.bf16 %v672_v62  ;;  %v683_v59 = vld [vmem:[%s4654_s0 + $0x108] sm:$0xff] }
  0xa4   :  { %3530 = vmatpush3.bf16.msra.mxu0 %v3668_v52 }
  0xa5   :  { %3531 = vmatprep.subr.bf16.mxu0 %v3669_v55 }
  0xa7   :  { %1063 = vmatmul.mubr.bf16.gmra.mxu1 %v698_v4  ;;  %v732_v4 = vunpack.c.h.s8.bf16 %v672_v62 }
  0xa8   :  { %1070 = vmatprep.mubr.bf16.mxu1 %v702_v7  ;;  %3532 = vmatpush3.bf16.msra.mxu0 %v3669_v55  ;;  %v735_v7 = vunpack.c.l.s8.bf16 %v675_v5  ;;  %v753_v55 = vunpack.c.l.s8.bf16 %v684_v51 }
  0xa9   :  { %3502 = vmatmul.mubr.bf16.gmra.mxu0 %v739_v9  ;;  %v734_v9 = vunpack.c.l.s8.bf16 %v674_v8 }
  0xaa   :  { %3505 = vmatprep.mubr.bf16.mxu0 %v742_v10  ;;  %v738_v10 = vunpack.c.h.s8.bf16 %v675_v5 }
  0xaf   :  { %1071 = vmatmul.mubr.bf16.gmra.mxu1 %v701_v14  ;;  %v678_v14 = vld [vmem:[%s4654_s0 + $0xe0] sm:$0xff] }
  0xb0   :  { %1078 = vmatprep.mubr.bf16.mxu1 %v705_v17  ;;  %v737_v17 = vunpack.c.h.s8.bf16 %v674_v8  ;;  %v755_v8 = vunpack.c.h.s8.bf16 %v683_v59 }
  0xb1   :  { %3506 = vmatmul.mubr.bf16.gmra.mxu0 %v745_v19  ;;  %v741_v19 = vunpack.c.l.s8.bf16 %v678_v14 }
  0xb2   :  { %3509 = vmatprep.mubr.bf16.mxu0 %v748_v20 }
  0xb7   :  { %1079 = vmatmul.mubr.bf16.gmra.mxu1 %v704_v24  ;;  %v677_v24 = vld [vmem:[%s4654_s0 + $0xd8] sm:$0xff] }
  0xb8   :  { %1086 = vmatprep.mubr.bf16.mxu1 %v708_v27  ;;  %v740_v28 = vunpack.c.l.s8.bf16 %v677_v24 }
  0xb9   :  { %3510 = vmatmul.mubr.bf16.gmra.mxu0 %v751_v29  ;;  %v744_v29 = vunpack.c.h.s8.bf16 %v678_v14 }
  0xba   :  { %3513 = vmatprep.mubr.bf16.mxu0 %v754_v30 }
  0xbf   :  { %1087 = vmatmul.mubr.bf16.gmra.mxu1 %v707_v34 }
  0xc0   :  { %1094 = vmatprep.mubr.bf16.mxu1 %v711_v36  ;;  %v743_v36 = vunpack.c.h.s8.bf16 %v677_v24 }
  0xc1   :  { %3514 = vmatmul.mubr.bf16.gmra.mxu0 %v757_v39 }
  0xc7   :  { %1095 = vmatmul.mubr.bf16.gmra.mxu1 %v710_v43 }
  0xc8   :  { %1102 = vmatprep.mubr.bf16.mxu1 %v714_v44 }
  0xcf   :  { %1103 = vmatmul.mubr.bf16.gmra.mxu1 %v713_v48 }
  0xd0   :  { %1110 = vmatprep.mubr.bf16.mxu1 %v717_v49 }
  0xd7   :  { %1111 = vmatmul.mubr.bf16.gmra.mxu1 %v716_v53 }
  0xd8   :  { %1118 = vmatprep.mubr.bf16.mxu1 %v720_v54  ;;  %v749_v54 = vunpack.c.h.s8.bf16 %v680_v41 }
  0xdf   :  { %1119 = vmatmul.mubr.bf16.gmra.mxu1 %v719_v57 }
  0xe0   :  { %1126 = vmatprep.mubr.bf16.mxu1 %v723_v58 }
  0xe7   :  { %1127 = vmatmul.mubr.bf16.gmra.mxu1 %v722_v60 }
  0xe8   :  { %1134 = vmatprep.mubr.bf16.mxu1 %v726_v61 }
  0xef   :  { %1135 = vmatmul.mubr.bf16.gmra.mxu1 %v725_v63  ;;  %v752_v63 = vunpack.c.l.s8.bf16 %v683_v59 }
  0xf0   :  { %1142 = vmatprep.mubr.bf16.mxu1 %v729_v1  ;;  %v756_v1 = vunpack.c.h.s8.bf16 %v684_v51 }
  0xf7   :  { %1143 = vmatmul.mubr.bf16.gmra.mxu1 %v728_v3 }
  0xf8   :  { %1150 = vmatprep.mubr.bf16.mxu1 %v732_v4 }
  0xff   :  { %1151 = vmatmul.mubr.bf16.gmra.mxu1 %v731_v6 }
 0x100   :  { %1158 = vmatprep.mubr.bf16.mxu1 %v735_v7 }
 0x107   :  { %v4193_v11 = vpop.f32.mrf.mxu1  ;;  %1159 = vmatmul.mubr.bf16.gmra.mxu1 %v734_v9  ;;  %v4195_v12 = vpop.f32.mrf.mxu0 }
 0x108   :  { %1166 = vmatprep.mubr.bf16.mxu1 %v738_v10 }
 0x109   :  { %v4197_v13 = vpop.f32.mrf.mxu1  ;;  %v4202_v15 = vpop.f32.mrf.mxu0 }
 0x10b   :  { %v4204_v16 = vpop.f32.mrf.mxu1  ;;  %v4206_v18 = vpop.f32.mrf.mxu0 }
 0x10d   :  { %v4208_v20 = vpop.f32.mrf.mxu1  ;;  %v4210_v21 = vpop.f32.mrf.mxu0 }
 0x10f   :  { %v4212_v22 = vpop.f32.mrf.mxu1  ;;  %1167 = vmatmul.mubr.bf16.gmra.mxu1 %v737_v17  ;;  %v4214_v23 = vpop.f32.mrf.mxu0 }
 0x110   :  { %1174 = vmatprep.mubr.bf16.mxu1 %v741_v19 }
 0x111   :  { %v4219_v25 = vpop.f32.mrf.mxu1  ;;  %v4221_v26 = vpop.f32.mrf.mxu0 }
 0x113   :  { %v4223_v27 = vpop.f32.mrf.mxu1  ;;  %v4227_v31 = vpop.f32.mrf.mxu0 }
 0x115   :  { %v4225_v30 = vpop.f32.mrf.mxu1  ;;  %v4236_v34 = vpop.f32.mrf.mxu0 }
 0x117   :  { %v4229_v32 = vpop.f32.mrf.mxu1  ;;  %1175 = vmatmul.mubr.bf16.gmra.mxu1 %v740_v28  ;;  %v4242_v39 = vpop.f32.mrf.mxu0 }
 0x118   :  { %1182 = vmatprep.mubr.bf16.mxu1 %v744_v29  ;;  %v1646_v28 = vpop.permute.xlu0 %1645 }
 0x119   :  { %v4231_v0 = vpop.f32.mrf.mxu1  ;;  %v4251_v43 = vpop.f32.mrf.mxu0 }
 0x11b   :  { %v4238_v35 = vpop.f32.mrf.mxu1  ;;  %v4257_v48 = vpop.f32.mrf.mxu0 }
 0x11c   :  { %v1651_v51 = vpop.permute.xlu0 %1650 }
 0x11d   :  { %v4240_v38 = vpop.f32.mrf.mxu1  ;;  %v4266_v52 = vpop.f32.mrf.mxu0 }
 0x11f   :  { %v4244_v40 = vpop.f32.mrf.mxu1  ;;  %1183 = vmatmul.mubr.bf16.gmra.mxu1 %v743_v36  ;;  %v4272_v57 = vpop.f32.mrf.mxu0 }
 0x120   :  { %1190 = vmatprep.mubr.bf16.mxu1 %v747_v37 }
 0x121   :  { %v4249_v42 = vpop.f32.mrf.mxu1  ;;  %v4281_v61 = vpop.f32.mrf.mxu0 }
 0x123   :  { %v4253_v44 = vpop.f32.mrf.mxu1  ;;  %v4287_v3 = vpop.f32.mrf.mxu0 }
 0x125   :  { %v4255_v47 = vpop.f32.mrf.mxu1  ;;  %v4293_v6 = vpop.f32.mrf.mxu0 }
 0x127   :  { %v4259_v49 = vpop.f32.mrf.mxu1  ;;  %1191 = vmatmul.mubr.bf16.gmra.mxu1 %v746_v45 }
 0x128   :  { %1198 = vmatprep.mubr.bf16.mxu1 %v750_v46 }
 0x129   :  { %v4261_v50 = vpop.f32.mrf.mxu1  ;;  %v3471_v10 = vpop.f32.mrf.mxu0 }
 0x12b   :  { %v4268_v53 = vpop.f32.mrf.mxu1  ;;  %v1257_v19 = vpop.f32.mrf.mxu0 }
 0x12d   :  { %v4270_v56 = vpop.f32.mrf.mxu1  ;;  %v3472_v33 = vpop.f32.mrf.mxu0 }
 0x12f   :  { %v4274_v58 = vpop.f32.mrf.mxu1  ;;  %1199 = vmatmul.mubr.bf16.gmra.mxu1 %v749_v54  ;;  %v1260_v41 = vpop.f32.mrf.mxu0 }
 0x130   :  { %1206 = vmatprep.mubr.bf16.mxu1 %v753_v55 }
 0x131   :  { %v4279_v60 = vpop.f32.mrf.mxu1  ;;  %v3475_v59 = vpop.f32.mrf.mxu0 }
 0x133   :  { %v4283_v62 = vpop.f32.mrf.mxu1 }
 0x134   :  { %4662 = vst [vmem:[#allocation14_spill] sm:$0xff] %v4283_v62 }
 0x135   :  { %v4285_v2 = vpop.f32.mrf.mxu1 }
 0x136   :  { %4663 = vst [vmem:[#allocation15_spill] sm:$0xff] %v4285_v2 }
 0x137   :  { %v4289_v4 = vpop.f32.mrf.mxu1  ;;  %1207 = vmatmul.mubr.bf16.gmra.mxu1 %v752_v63 }
 0x138   :  { %4664 = vst [vmem:[#allocation16_spill] sm:$0xff] %v4289_v4  ;;  %1214 = vmatprep.mubr.bf16.mxu1 %v756_v1 }
 0x139   :  { %v4291_v5 = vpop.f32.mrf.mxu1 }
 0x13a   :  { %4665 = vst [vmem:[#allocation17_spill] sm:$0xff] %v4291_v5 }
 0x13b   :  { %v4295_v7 = vpop.f32.mrf.mxu1 }
 0x13c   :  { %4666 = vst [vmem:[#allocation18_spill] sm:$0xff] %v4295_v7 }
 0x13d   :  { %v4297_v9 = vpop.f32.mrf.mxu1 }
 0x13e   :  { %4667 = vst [vmem:[#allocation19_spill] sm:$0xff] %v4297_v9 }
 0x13f   :  { %v4299_v14 = vpop.f32.mrf.mxu1  ;;  %1215 = vmatmul.mubr.bf16.gmra.mxu1 %v755_v8  ;;  %v1656_v8 = vpop.permute.xlu1 %1655 }
 0x140   :  { %4668 = vst [vmem:[#allocation20_spill] sm:$0xff] %v4299_v14 }
 0x141   :  { %v4301_v17 = vpop.f32.mrf.mxu1 }
 0x142   :  { %4669 = vst [vmem:[#allocation21_spill] sm:$0xff] %v4301_v17 }
 0x143   :  { %v4303_v24 = vpop.f32.mrf.mxu1  ;;  %v1661_v5 = vpop.permute.xlu1 %1660 }
 0x144   :  { %4670 = vst [vmem:[#allocation22_spill] sm:$0xff] %v4303_v24  ;;  %v1273_v24 = vpop.f32.mrf.mxu0 }
 0x145   :  { %v4305_v29 = vpop.f32.mrf.mxu1 }
 0x146   :  { %4671 = vst [vmem:[#allocation23_spill] sm:$0xff] %v4305_v29  ;;  %v3476_v2 = vpop.f32.mrf.mxu0 }
 0x147   :  { %v1032_v36 = vpop.f32.mrf.mxu1 }
 0x148   :  { %v1258_v45 = vadd.f32 %v1257_v19, %v1032_v36 }
 0x149   :  { %v1034_v37 = vpop.f32.mrf.mxu1 }
 0x14a   :  { %v1883_v63 = vmul.f32 %v1646_v28, %v1258_v45 }
 0x14b   :  { %v1035_v46 = vpop.f32.mrf.mxu1 }
 0x14c   :  { %v1261_v54 = vadd.f32 %v1260_v41, %v1035_v46 }
 0x14d   :  { %v1037_v55 = vpop.f32.mrf.mxu1 }
 0x14e   :  { %v1884_v1 = vmul.f32 %v1651_v51, %v1261_v54  ;;  %v1276_v55 = vpop.f32.mrf.mxu0  ;;  %v1666_v51 = vpop.permute.xlu0 %1665 }
 0x14f   :  { %v1040_v17 = vpop.f32.mrf.mxu1  ;;  %v1671_v54 = vpop.permute.xlu1 %1670 }
 0x150   :  { %v1931_v14 = vpack.c.bf16 %v1884_v1, %v1883_v63  ;;  %v1266_v7 = vadd.f32 %v3471_v10, %v1040_v17  ;;  %v3479_v10 = vpop.f32.mrf.mxu0 }
 0x151   :  { %v1042_v9 = vpop.f32.mrf.mxu1 }
 0x152   :  { %3533 = vmatprep.mubr.bf16.mxu0 %v1931_v14  ;;  %v1885_v19 = vmul.f32 %v1656_v8, %v1266_v7 }
 0x153   :  { %v1043_v29 = vpop.f32.mrf.mxu1  ;;  %v1681_v8 = vpop.permute.xlu1 %1680 }
 0x154   :  { %v1269_v4 = vadd.f32 %v3472_v33, %v1043_v29 }
 0x155   :  { %v1045_v37 = vpop.f32.mrf.mxu1 }
 0x156   :  { %v1886_v36 = vmul.f32 %v1661_v5, %v1269_v4  ;;  %v1289_v37 = vpop.f32.mrf.mxu0  ;;  %v1676_v5 = vpop.permute.xlu0 %1675 }
 0x157   :  { %v1048_v62 = vpop.f32.mrf.mxu1 }
 0x158   :  { %v1932_v41 = vpack.c.bf16 %v1886_v36, %v1885_v19  ;;  %v1274_v28 = vadd.f32 %v1273_v24, %v1048_v62  ;;  %v3480_v24 = vpop.f32.mrf.mxu0 }
 0x159   :  { %v1050_v46 = vpop.f32.mrf.mxu1 }
 0x15a   :  { %3534 = vmatmul.mubr.bf16.vlgmr.msra.gmra.mxu0 %v1932_v41  ;;  %v1887_v14 = vmul.f32 %v1666_v51, %v1274_v28 }
 0x15b   :  { %v1051_v45 = vpop.f32.mrf.mxu1 }
 0x15c   :  { %v1277_v9 = vadd.f32 %v1276_v55, %v1051_v45 }
 0x15d   :  { %v1053_v63 = vpop.f32.mrf.mxu1 }
 0x15e   :  { %v1888_v17 = vmul.f32 %v1671_v54, %v1277_v9  ;;  %v1292_v63 = vpop.f32.mrf.mxu0  ;;  %v1686_v54 = vpop.permute.xlu0 %1685 }
 0x15f   :  { %v1056_v1 = vpop.f32.mrf.mxu1  ;;  %v1691_v9 = vpop.permute.xlu1 %1690 }
 0x160   :  { %v1933_v29 = vpack.c.bf16 %v1888_v17, %v1887_v14  ;;  %v1282_v7 = vadd.f32 %v3475_v59, %v1056_v1  ;;  %v3483_v17 = vpop.f32.mrf.mxu0 }
 0x161   :  { %v1058_v33 = vpop.f32.mrf.mxu1 }
 0x162   :  { %3537 = vmatprep.mubr.bf16.mxu0 %v1933_v29  ;;  %v1889_v36 = vmul.f32 %v1676_v5, %v1282_v7 }
 0x163   :  { %v1059_v4 = vpop.f32.mrf.mxu1 }
 0x164   :  { %v1285_v19 = vadd.f32 %v3476_v2, %v1059_v4 }
 0x165   :  { %v1061_v62 = vpop.f32.mrf.mxu1 }
 0x166   :  { %v1890_v41 = vmul.f32 %v1681_v8, %v1285_v19  ;;  %v1305_v62 = vpop.f32.mrf.mxu0  ;;  %v1696_v8 = vpop.permute.xlu0 %1695 }
 0x167   :  { %v1064_v46 = vpop.f32.mrf.mxu1  ;;  %v1701_v19 = vpop.permute.xlu1 %1700 }
 0x168   :  { %v1934_v55 = vpack.c.bf16 %v1890_v41, %v1889_v36  ;;  %v1290_v28 = vadd.f32 %v1289_v37, %v1064_v46  ;;  %v3484_v41 = vpop.f32.mrf.mxu0 }
 0x169   :  { %v1066_v45 = vpop.f32.mrf.mxu1 }
 0x16a   :  { %3538 = vmatmul.mubr.bf16.gmra.mxu0 %v1934_v55  ;;  %v1891_v1 = vmul.f32 %v1686_v54, %v1290_v28 }
 0x16b   :  { %v1067_v51 = vpop.f32.mrf.mxu1 }
 0x16c   :  { %v1293_v14 = vadd.f32 %v1292_v63, %v1067_v51 }
 0x16d   :  { %v1069_v59 = vpop.f32.mrf.mxu1 }
 0x16e   :  { %v1892_v29 = vmul.f32 %v1691_v9, %v1293_v14  ;;  %v1308_v59 = vpop.f32.mrf.mxu0  ;;  %v1706_v9 = vpop.permute.xlu0 %1705 }
 0x16f   :  { %v1072_v33 = vpop.f32.mrf.mxu1  ;;  %v1711_v14 = vpop.permute.xlu1 %1710 }
 0x170   :  { %v1935_v2 = vpack.c.bf16 %v1892_v29, %v1891_v1  ;;  %v1298_v7 = vadd.f32 %v3479_v10, %v1072_v33  ;;  %v3487_v29 = vpop.f32.mrf.mxu0 }
 0x171   :  { %v1074_v4 = vpop.f32.mrf.mxu1 }
 0x172   :  { %3541 = vmatprep.mubr.bf16.mxu0 %v1935_v2  ;;  %v1893_v46 = vmul.f32 %v1696_v8, %v1298_v7 }
 0x173   :  { %v1075_v5 = vpop.f32.mrf.mxu1 }
 0x174   :  { %v1301_v36 = vadd.f32 %v3480_v24, %v1075_v5 }
 0x175   :  { %v1077_v37 = vpop.f32.mrf.mxu1 }
 0x176   :  { %v1894_v55 = vmul.f32 %v1701_v19, %v1301_v36  ;;  %v1321_v37 = vpop.f32.mrf.mxu0  ;;  %v1716_v19 = vpop.permute.xlu0 %1715 }
 0x177   :  { %v1080_v45 = vpop.f32.mrf.mxu1  ;;  %v1721_v36 = vpop.permute.xlu1 %1720 }
 0x178   :  { %v1936_v63 = vpack.c.bf16 %v1894_v55, %v1893_v46  ;;  %v1306_v28 = vadd.f32 %v1305_v62, %v1080_v45  ;;  %v3488_v55 = vpop.f32.mrf.mxu0 }
 0x179   :  { %v1082_v51 = vpop.f32.mrf.mxu1 }
 0x17a   :  { %3542 = vmatmul.mubr.bf16.gmra.mxu0 %v1936_v63  ;;  %v1895_v33 = vmul.f32 %v1706_v9, %v1306_v28 }
 0x17b   :  { %v1083_v54 = vpop.f32.mrf.mxu1 }
 0x17c   :  { %v1309_v1 = vadd.f32 %v1308_v59, %v1083_v54 }
 0x17d   :  { %v1085_v10 = vpop.f32.mrf.mxu1 }
 0x17e   :  { %v1896_v2 = vmul.f32 %v1711_v14, %v1309_v1  ;;  %v1324_v10 = vpop.f32.mrf.mxu0  ;;  %v1726_v14 = vpop.permute.xlu0 %1725 }
 0x17f   :  { %v1088_v4 = vpop.f32.mrf.mxu1  ;;  %v1731_v1 = vpop.permute.xlu1 %1730 }
 0x180   :  { %v1937_v24 = vpack.c.bf16 %v1896_v2, %v1895_v33  ;;  %v1314_v7 = vadd.f32 %v3483_v17, %v1088_v4  ;;  %v3491_v2 = vpop.f32.mrf.mxu0 }
 0x181   :  { %v1090_v5 = vpop.f32.mrf.mxu1 }
 0x182   :  { %3545 = vmatprep.mubr.bf16.mxu0 %v1937_v24  ;;  %v1897_v45 = vmul.f32 %v1716_v19, %v1314_v7 }
 0x183   :  { %v1091_v8 = vpop.f32.mrf.mxu1 }
 0x184   :  { %v1317_v46 = vadd.f32 %v3484_v41, %v1091_v8 }
 0x185   :  { %v1093_v62 = vpop.f32.mrf.mxu1 }
 0x186   :  { %v1898_v63 = vmul.f32 %v1721_v36, %v1317_v46  ;;  %v1337_v62 = vpop.f32.mrf.mxu0  ;;  %v1736_v36 = vpop.permute.xlu0 %1735 }
 0x187   :  { %v1096_v51 = vpop.f32.mrf.mxu1  ;;  %v1741_v46 = vpop.permute.xlu1 %1740 }
 0x188   :  { %v1938_v59 = vpack.c.bf16 %v1898_v63, %v1897_v45  ;;  %v1322_v28 = vadd.f32 %v1321_v37, %v1096_v51  ;;  %v3492_v63 = vpop.f32.mrf.mxu0 }
 0x189   :  { %v1098_v54 = vpop.f32.mrf.mxu1 }
 0x18a   :  { %3546 = vmatmul.mubr.bf16.gmra.mxu0 %v1938_v59  ;;  %v1899_v4 = vmul.f32 %v1726_v14, %v1322_v28 }
 0x18b   :  { %v1099_v9 = vpop.f32.mrf.mxu1 }
 0x18c   :  { %v1325_v33 = vadd.f32 %v1324_v10, %v1099_v9 }
 0x18d   :  { %v1101_v17 = vpop.f32.mrf.mxu1 }
 0x18e   :  { %v1900_v24 = vmul.f32 %v1731_v1, %v1325_v33  ;;  %v1340_v17 = vpop.f32.mrf.mxu0  ;;  %v1746_v1 = vpop.permute.xlu0 %1745 }
 0x18f   :  { %v1104_v5 = vpop.f32.mrf.mxu1  ;;  %v1751_v33 = vpop.permute.xlu1 %1750 }
 0x190   :  { %v1939_v41 = vpack.c.bf16 %v1900_v24, %v1899_v4  ;;  %v1330_v7 = vadd.f32 %v3487_v29, %v1104_v5  ;;  %v3495_v24 = vpop.f32.mrf.mxu0 }
 0x191   :  { %v1106_v8 = vpop.f32.mrf.mxu1 }
 0x192   :  { %3549 = vmatprep.mubr.bf16.mxu0 %v1939_v41  ;;  %v1901_v51 = vmul.f32 %v1736_v36, %v1330_v7 }
 0x193   :  { %v1107_v19 = vpop.f32.mrf.mxu1 }
 0x194   :  { %v1333_v45 = vadd.f32 %v3488_v55, %v1107_v19 }
 0x195   :  { %v1109_v37 = vpop.f32.mrf.mxu1 }
 0x196   :  { %v1902_v59 = vmul.f32 %v1741_v46, %v1333_v45  ;;  %v1353_v37 = vpop.f32.mrf.mxu0  ;;  %v1756_v46 = vpop.permute.xlu0 %1755 }
 0x197   :  { %v1112_v54 = vpop.f32.mrf.mxu1  ;;  %v1761_v45 = vpop.permute.xlu1 %1760 }
 0x198   :  { %v1940_v10 = vpack.c.bf16 %v1902_v59, %v1901_v51  ;;  %v1338_v28 = vadd.f32 %v1337_v62, %v1112_v54  ;;  %v3496_v59 = vpop.f32.mrf.mxu0 }
 0x199   :  { %v1114_v9 = vpop.f32.mrf.mxu1 }
 0x19a   :  { %3550 = vmatmul.mubr.bf16.gmra.mxu0 %v1940_v10  ;;  %v1903_v5 = vmul.f32 %v1746_v1, %v1338_v28 }
 0x19b   :  { %v1115_v14 = vpop.f32.mrf.mxu1 }
 0x19c   :  { %v1341_v4 = vadd.f32 %v1340_v17, %v1115_v14 }
 0x19d   :  { %v1117_v29 = vpop.f32.mrf.mxu1 }
 0x19e   :  { %v1904_v41 = vmul.f32 %v1751_v33, %v1341_v4  ;;  %v1356_v29 = vpop.f32.mrf.mxu0  ;;  %v1766_v33 = vpop.permute.xlu0 %1765 }
 0x19f   :  { %v1120_v8 = vpop.f32.mrf.mxu1  ;;  %v1771_v4 = vpop.permute.xlu1 %1770 }
 0x1a0   :  { %v1941_v55 = vpack.c.bf16 %v1904_v41, %v1903_v5  ;;  %v1346_v7 = vadd.f32 %v3491_v2, %v1120_v8  ;;  %v3499_v41 = vpop.f32.mrf.mxu0 }
 0x1a1   :  { %v1122_v19 = vpop.f32.mrf.mxu1 }
 0x1a2   :  { %3553 = vmatprep.mubr.bf16.mxu0 %v1941_v55  ;;  %v1905_v54 = vmul.f32 %v1756_v46, %v1346_v7 }
 0x1a3   :  { %v1123_v36 = vpop.f32.mrf.mxu1 }
 0x1a4   :  { %v1349_v51 = vadd.f32 %v3492_v63, %v1123_v36 }
 0x1a5   :  { %v1125_v62 = vpop.f32.mrf.mxu1 }
 0x1a6   :  { %v1906_v10 = vmul.f32 %v1761_v45, %v1349_v51  ;;  %v1369_v62 = vpop.f32.mrf.mxu0  ;;  %v1776_v45 = vpop.permute.xlu0 %1775 }
 0x1a7   :  { %v1128_v9 = vpop.f32.mrf.mxu1  ;;  %v1781_v51 = vpop.permute.xlu1 %1780 }
 0x1a8   :  { %v1942_v17 = vpack.c.bf16 %v1906_v10, %v1905_v54  ;;  %v1354_v28 = vadd.f32 %v1353_v37, %v1128_v9  ;;  %v3500_v10 = vpop.f32.mrf.mxu0 }
 0x1a9   :  { %v1130_v14 = vpop.f32.mrf.mxu1 }
 0x1aa   :  { %3554 = vmatmul.mubr.bf16.gmra.mxu0 %v1942_v17  ;;  %v1907_v8 = vmul.f32 %v1766_v33, %v1354_v28 }
 0x1ab   :  { %v1131_v1 = vpop.f32.mrf.mxu1 }
 0x1ac   :  { %v1357_v5 = vadd.f32 %v1356_v29, %v1131_v1 }
 0x1ad   :  { %v1133_v2 = vpop.f32.mrf.mxu1 }
 0x1ae   :  { %v1908_v55 = vmul.f32 %v1771_v4, %v1357_v5  ;;  %v1372_v2 = vpop.f32.mrf.mxu0  ;;  %v1786_v4 = vpop.permute.xlu0 %1785 }
 0x1af   :  { %v1136_v19 = vpop.f32.mrf.mxu1  ;;  %v1791_v5 = vpop.permute.xlu1 %1790 }
 0x1b0   :  { %v1943_v63 = vpack.c.bf16 %v1908_v55, %v1907_v8  ;;  %v1362_v7 = vadd.f32 %v3495_v24, %v1136_v19  ;;  %v3503_v55 = vpop.f32.mrf.mxu0 }
 0x1b1   :  { %v1138_v36 = vpop.f32.mrf.mxu1 }
 0x1b2   :  { %3557 = vmatprep.mubr.bf16.mxu0 %v1943_v63  ;;  %v1909_v9 = vmul.f32 %v1776_v45, %v1362_v7 }
 0x1b3   :  { %v1139_v46 = vpop.f32.mrf.mxu1 }
 0x1b4   :  { %v1365_v54 = vadd.f32 %v3496_v59, %v1139_v46 }
 0x1b5   :  { %v1141_v37 = vpop.f32.mrf.mxu1 }
 0x1b6   :  { %v1910_v17 = vmul.f32 %v1781_v51, %v1365_v54  ;;  %v1385_v37 = vpop.f32.mrf.mxu0  ;;  %v1796_v51 = vpop.permute.xlu0 %1795 }
 0x1b7   :  { %v1144_v14 = vpop.f32.mrf.mxu1  ;;  %v1801_v54 = vpop.permute.xlu1 %1800 }
 0x1b8   :  { %v1944_v29 = vpack.c.bf16 %v1910_v17, %v1909_v9  ;;  %v1370_v28 = vadd.f32 %v1369_v62, %v1144_v14  ;;  %v3504_v17 = vpop.f32.mrf.mxu0 }
 0x1b9   :  { %v1146_v1 = vpop.f32.mrf.mxu1 }
 0x1ba   :  { %3558 = vmatmul.mubr.bf16.gmra.mxu0 %v1944_v29  ;;  %v1911_v19 = vmul.f32 %v1786_v4, %v1370_v28 }
 0x1bb   :  { %v1147_v33 = vpop.f32.mrf.mxu1 }
 0x1bc   :  { %v1373_v8 = vadd.f32 %v1372_v2, %v1147_v33 }
 0x1bd   :  { %v1149_v24 = vpop.f32.mrf.mxu1 }
 0x1be   :  { %v1912_v63 = vmul.f32 %v1791_v5, %v1373_v8  ;;  %v1388_v24 = vpop.f32.mrf.mxu0  ;;  %v1806_v5 = vpop.permute.xlu0 %1805 }
 0x1bf   :  { %v1152_v36 = vpop.f32.mrf.mxu1  ;;  %v1811_v8 = vpop.permute.xlu1 %1810 }
 0x1c0   :  { %v1945_v59 = vpack.c.bf16 %v1912_v63, %v1911_v19  ;;  %v1378_v7 = vadd.f32 %v3499_v41, %v1152_v36  ;;  %v3507_v63 = vpop.f32.mrf.mxu0 }
 0x1c1   :  { %v1154_v46 = vpop.f32.mrf.mxu1 }
 0x1c2   :  { %3561 = vmatprep.mubr.bf16.mxu0 %v1945_v59  ;;  %v1913_v14 = vmul.f32 %v1796_v51, %v1378_v7 }
 0x1c3   :  { %v1155_v45 = vpop.f32.mrf.mxu1 }
 0x1c4   :  { %v1381_v9 = vadd.f32 %v3500_v10, %v1155_v45 }
 0x1c5   :  { %v1157_v62 = vpop.f32.mrf.mxu1 }
 0x1c6   :  { %v1914_v29 = vmul.f32 %v1801_v54, %v1381_v9  ;;  %v1401_v62 = vpop.f32.mrf.mxu0  ;;  %v1816_v54 = vpop.permute.xlu0 %1815 }
 0x1c7   :  { %v1160_v1 = vpop.f32.mrf.mxu1  ;;  %v1821_v9 = vpop.permute.xlu1 %1820 }
 0x1c8   :  { %v1946_v2 = vpack.c.bf16 %v1914_v29, %v1913_v14  ;;  %v1386_v28 = vadd.f32 %v1385_v37, %v1160_v1  ;;  %v3508_v29 = vpop.f32.mrf.mxu0 }
 0x1c9   :  { %v1162_v33 = vpop.f32.mrf.mxu1 }
 0x1ca   :  { %3562 = vmatmul.mubr.bf16.gmra.mxu0 %v1946_v2  ;;  %v1915_v36 = vmul.f32 %v1806_v5, %v1386_v28 }
 0x1cb   :  { %v1163_v4 = vpop.f32.mrf.mxu1 }
 0x1cc   :  { %v1389_v19 = vadd.f32 %v1388_v24, %v1163_v4 }
 0x1cd   :  { %v1165_v41 = vpop.f32.mrf.mxu1 }
 0x1ce   :  { %v1916_v59 = vmul.f32 %v1811_v8, %v1389_v19  ;;  %v1404_v41 = vpop.f32.mrf.mxu0  ;;  %v1826_v8 = vpop.permute.xlu0 %1825 }
 0x1cf   :  { %v1168_v46 = vpop.f32.mrf.mxu1  ;;  %v1831_v19 = vpop.permute.xlu1 %1830 }
 0x1d0   :  { %v1947_v10 = vpack.c.bf16 %v1916_v59, %v1915_v36  ;;  %v1394_v7 = vadd.f32 %v3503_v55, %v1168_v46  ;;  %v3511_v59 = vpop.f32.mrf.mxu0 }
 0x1d1   :  { %v1170_v45 = vpop.f32.mrf.mxu1 }
 0x1d2   :  { %3565 = vmatprep.mubr.bf16.mxu0 %v1947_v10  ;;  %v1917_v1 = vmul.f32 %v1816_v54, %v1394_v7 }
 0x1d3   :  { %v1171_v51 = vpop.f32.mrf.mxu1 }
 0x1d4   :  { %v1397_v14 = vadd.f32 %v3504_v17, %v1171_v51 }
 0x1d5   :  { %v1173_v37 = vpop.f32.mrf.mxu1 }
 0x1d6   :  { %v1918_v2 = vmul.f32 %v1821_v9, %v1397_v14  ;;  %v1417_v37 = vpop.f32.mrf.mxu0  ;;  %v1836_v9 = vpop.permute.xlu0 %1835 }
 0x1d7   :  { %v1176_v33 = vpop.f32.mrf.mxu1  ;;  %v1841_v14 = vpop.permute.xlu1 %1840 }
 0x1d8   :  { %v1948_v24 = vpack.c.bf16 %v1918_v2, %v1917_v1  ;;  %v1402_v28 = vadd.f32 %v1401_v62, %v1176_v33  ;;  %v3512_v2 = vpop.f32.mrf.mxu0 }
 0x1d9   :  { %v1178_v4 = vpop.f32.mrf.mxu1 }
 0x1da   :  { %3566 = vmatmul.mubr.bf16.gmra.mxu0 %v1948_v24  ;;  %v1919_v46 = vmul.f32 %v1826_v8, %v1402_v28 }
 0x1db   :  { %v1179_v5 = vpop.f32.mrf.mxu1 }
 0x1dc   :  { %v1405_v36 = vadd.f32 %v1404_v41, %v1179_v5 }
 0x1dd   :  { %v1181_v55 = vpop.f32.mrf.mxu1 }
 0x1de   :  { %v1920_v10 = vmul.f32 %v1831_v19, %v1405_v36  ;;  %v1420_v55 = vpop.f32.mrf.mxu0  ;;  %v1846_v19 = vpop.permute.xlu0 %1845 }
 0x1df   :  { %v1184_v45 = vpop.f32.mrf.mxu1  ;;  %v1851_v36 = vpop.permute.xlu1 %1850 }
 0x1e0   :  { %v1949_v17 = vpack.c.bf16 %v1920_v10, %v1919_v46  ;;  %v1410_v7 = vadd.f32 %v3507_v63, %v1184_v45  ;;  %v3515_v10 = vpop.f32.mrf.mxu0 }
 0x1e1   :  { %v1186_v51 = vpop.f32.mrf.mxu1 }
 0x1e2   :  { %3569 = vmatprep.mubr.bf16.mxu0 %v1949_v17  ;;  %v1921_v33 = vmul.f32 %v1836_v9, %v1410_v7 }
 0x1e3   :  { %v1187_v54 = vpop.f32.mrf.mxu1 }
 0x1e4   :  { %v1413_v1 = vadd.f32 %v3508_v29, %v1187_v54 }
 0x1e5   :  { %v1189_v62 = vpop.f32.mrf.mxu1 }
 0x1e6   :  { %v1922_v24 = vmul.f32 %v1841_v14, %v1413_v1  ;;  %v1433_v62 = vpop.f32.mrf.mxu0  ;;  %v1856_v14 = vpop.permute.xlu0 %1855 }
 0x1e7   :  { %v1192_v4 = vpop.f32.mrf.mxu1  ;;  %v1861_v1 = vpop.permute.xlu1 %1860 }
 0x1e8   :  { %v1950_v41 = vpack.c.bf16 %v1922_v24, %v1921_v33  ;;  %v1418_v28 = vadd.f32 %v1417_v37, %v1192_v4  ;;  %v3516_v24 = vpop.f32.mrf.mxu0 }
 0x1e9   :  { %v1194_v5 = vpop.f32.mrf.mxu1 }
 0x1ea   :  { %3570 = vmatmul.mubr.bf16.gmra.mxu0 %v1950_v41  ;;  %v1923_v45 = vmul.f32 %v1846_v19, %v1418_v28 }
 0x1eb   :  { %v1195_v8 = vpop.f32.mrf.mxu1 }
 0x1ec   :  { %v1421_v46 = vadd.f32 %v1420_v55, %v1195_v8 }
 0x1ed   :  { %v1197_v63 = vpop.f32.mrf.mxu1 }
 0x1ee   :  { %v1924_v17 = vmul.f32 %v1851_v36, %v1421_v46  ;;  %v1436_v63 = vpop.f32.mrf.mxu0  ;;  %v1866_v36 = vpop.permute.xlu0 %1865 }
 0x1ef   :  { %v1200_v51 = vpop.f32.mrf.mxu1 }
 0x1f0   :  { %v1951_v29 = vpack.c.bf16 %v1924_v17, %v1923_v45  ;;  %v1426_v7 = vadd.f32 %v3511_v59, %v1200_v51  ;;  %v1871_v45 = vpop.permute.xlu1 %1870 }
 0x1f1   :  { %v1202_v54 = vpop.f32.mrf.mxu1 }
 0x1f2   :  { %3573 = vmatprep.mubr.bf16.mxu0 %v1951_v29  ;;  %v1925_v4 = vmul.f32 %v1856_v14, %v1426_v7  ;;  %v1876_v14 = vpop.permute.xlu0 %1875 }
 0x1f3   :  { %v1203_v9 = vpop.f32.mrf.mxu1 }
 0x1f4   :  { %v1429_v33 = vadd.f32 %v3512_v2, %v1203_v9 }
 0x1f5   :  { %v1205_v37 = vpop.f32.mrf.mxu1 }
 0x1f6   :  { %v1926_v41 = vmul.f32 %v1861_v1, %v1429_v33  ;;  %v1881_v33 = vpop.permute.xlu1 %1880 }
 0x1f7   :  { %v1208_v5 = vpop.f32.mrf.mxu1 }
 0x1f8   :  { %v1952_v55 = vpack.c.bf16 %v1926_v41, %v1925_v4  ;;  %v1434_v28 = vadd.f32 %v1433_v62, %v1208_v5 }
 0x1f9   :  { %v1210_v8 = vpop.f32.mrf.mxu1 }
 0x1fa   :  { %3574 = vmatmul.mubr.bf16.gmra.mxu0 %v1952_v55  ;;  %v1927_v17 = vmul.f32 %v1866_v36, %v1434_v28  ;;  %v4310_v55 = vld [vmem:[%s4660_s6] ss:$0 sm:$0xff]  ;;  %s3858_s6 = smov [#allocation10]  }
 0x1fb   :  { %v1211_v19 = vpop.f32.mrf.mxu1  ;;  %s2976_s23 = sshll.u32 %s3858_s6, 4  ;;  %s2977_s23 = int_to_ptr.vmem [resolvable:$true] %s2976_s23 }
 0x1fc   :  { %v1437_v46 = vadd.f32 %v1436_v63, %v1211_v19  ;;  %s3826_s24 = scalar_lea.vmem %s2977_s23, 3072  ;;  %p3831_p2 = scmp.lt.s32.totalorder %s2977_s23, %s2977_s23 }
 0x1fd   :  { %v1213_v59 = vpop.f32.mrf.mxu1  ;;  %p3827_p1 = scmp.ne.s32.totalorder %s2977_s23, %s3826_s24  ;;  %p3832_p3 = scmp.lt.s32.totalorder %s3826_s24, %s3826_s24 }
 0x1fe   :  { %v1928_v51 = vmul.f32 %v1871_v45, %v1437_v46 }
 0x1ff   :  { %v1216_v29 = vpop.f32.mrf.mxu1  ;;  %p3833_p4 = por %p3832_p3, %p3831_p2 }
 0x200   :  { %v1953_v54 = vpack.c.bf16 %v1928_v51, %v1927_v17  ;;  %v1442_v9 = vadd.f32 %v3515_v10, %v1216_v29 }
 0x201   :  { %v1218_v2 = vpop.f32.mrf.mxu1  ;;  %p3834_p5 = pnand %p3833_p4, %p3827_p1 }
 0x202   :  { %3577 = vmatprep.mubr.bf16.mxu0 %v1953_v54  ;;  %v1929_v4 = vmul.f32 %v1876_v14, %v1442_v9 }
 0x203   :  { %v1219_v7 = vpop.f32.mrf.mxu1 }
 0x204   :  { %v1445_v1 = vadd.f32 %v3516_v24, %v1219_v7 }
 0x205   :  { %v1221_v37 = vpop.f32.mrf.mxu1 }
 0x206   :  { %v1930_v62 = vmul.f32 %v1881_v33, %v1445_v1 }
 0x208   :  { %v1954_v41 = vpack.c.bf16 %v1930_v62, %v1929_v4 }
 0x20a   :  { %3578 = vmatmul.mubr.bf16.gmra.mxu0 %v1954_v41 }
 0x21a   :  { %v3535_v5 = vpop.f32.mrf.mxu0 }
 0x21b   :  { %v2294_v8 = vadd.f32 %v3535_v5, %v4195_v12 }
 0x21c   :  { %v2101_v63 = vpop.f32.mrf.mxu0 }
 0x21d   :  { %v4314_v10 = vadd.f32 %v4310_v55, %v2294_v8  ;;  %v2292_v24 = vadd.f32 %v2101_v63, %v4202_v15 }
 0x21e   :  { %v3536_v28 = vpop.f32.mrf.mxu0 }
 0x21f   :  { %v4318_v19 = vadd.f32 %v4310_v55, %v2292_v24  ;;  %v2295_v36 = vadd.f32 %v3536_v28, %v4206_v18  ;;  %v2397_v46 = vmul.f32 %v4314_v10, %v4314_v10 }
 0x220   :  { %v2104_v45 = vpop.f32.mrf.mxu0 }
 0x221   :  { %v2293_v59 = vadd.f32 %v2104_v45, %v4210_v21  ;;  %2447 = vadd.xlane.f32.xlu0 %v2397_v46  ;;  %v4325_v12 = vadd.f32 %v4310_v55, %v2295_v36  ;;  %v2395_v15 = vmul.f32 %v4318_v19, %v4318_v19 }
 0x223   :  { %v4328_v17 = vadd.f32 %v4310_v55, %v2293_v59  ;;  %v2398_v51 = vmul.f32 %v4325_v12, %v4325_v12 }
 0x225   :  { %2443 = vadd.xlane.f32.xlu0 %v2395_v15  ;;  %v2396_v18 = vmul.f32 %v4328_v17, %v4328_v17 }
 0x227   :  { %2445 = vadd.xlane.f32.xlu1 %v2396_v18 }
 0x229   :  { %2449 = vadd.xlane.f32.xlu0 %v2398_v51 }
 0x22a   :  { %v3539_v21 = vpop.f32.mrf.mxu0 }
 0x22b   :  { %v2298_v29 = vadd.f32 %v3539_v21, %v4214_v23 }
 0x22c   :  { %v2117_v54 = vpop.f32.mrf.mxu0 }
 0x22d   :  { %v4338_v2 = vadd.f32 %v4310_v55, %v2298_v29  ;;  %v2296_v9 = vadd.f32 %v2117_v54, %v4221_v26 }
 0x22e   :  { %v3540_v7 = vpop.f32.mrf.mxu0 }
 0x22f   :  { %v4342_v14 = vadd.f32 %v4310_v55, %v2296_v9  ;;  %v2299_v1 = vadd.f32 %v3540_v7, %v4227_v31  ;;  %v2401_v33 = vmul.f32 %v4338_v2, %v4338_v2 }
 0x230   :  { %v2120_v37 = vpop.f32.mrf.mxu0 }
 0x231   :  { %v4348_v4 = vadd.f32 %v4310_v55, %v2299_v1  ;;  %v2297_v23 = vadd.f32 %v2120_v37, %v4236_v34  ;;  %2455 = vadd.xlane.f32.xlu1 %v2401_v33  ;;  %v2399_v26 = vmul.f32 %v4342_v14, %v4342_v14 }
 0x233   :  { %v4352_v62 = vadd.f32 %v4310_v55, %v2297_v23  ;;  %v2402_v41 = vmul.f32 %v4348_v4, %v4348_v4 }
 0x235   :  { %2451 = vadd.xlane.f32.xlu1 %v2399_v26  ;;  %2457 = vadd.xlane.f32.xlu0 %v2402_v41  ;;  %v2400_v31 = vmul.f32 %v4352_v62, %v4352_v62 }
 0x239   :  { %2453 = vadd.xlane.f32.xlu0 %v2400_v31 }
 0x23a   :  { %v3543_v5 = vpop.f32.mrf.mxu0 }
 0x23b   :  { %v2302_v8 = vadd.f32 %v3543_v5, %v4242_v39 }
 0x23c   :  { %v2133_v34 = vpop.f32.mrf.mxu0 }
 0x23d   :  { %v4362_v63 = vadd.f32 %v4310_v55, %v2302_v8  ;;  %v2300_v24 = vadd.f32 %v2133_v34, %v4251_v43 }
 0x23e   :  { %v3544_v28 = vpop.f32.mrf.mxu0 }
 0x23f   :  { %v4366_v36 = vadd.f32 %v4310_v55, %v2300_v24  ;;  %v2303_v46 = vadd.f32 %v3544_v28, %v4257_v48  ;;  %v2405_v45 = vmul.f32 %v4362_v63, %v4362_v63 }
 0x240   :  { %v2136_v59 = vpop.f32.mrf.mxu0 }
 0x241   :  { %v4372_v15 = vadd.f32 %v4310_v55, %v2303_v46  ;;  %v2301_v39 = vadd.f32 %v2136_v59, %v4266_v52  ;;  %2463 = vadd.xlane.f32.xlu1 %v2405_v45  ;;  %v2403_v43 = vmul.f32 %v4366_v36, %v4366_v36 }
 0x243   :  { %v4376_v18 = vadd.f32 %v4310_v55, %v2301_v39  ;;  %v2406_v51 = vmul.f32 %v4372_v15, %v4372_v15 }
 0x245   :  { %2459 = vadd.xlane.f32.xlu1 %v2403_v43  ;;  %2465 = vadd.xlane.f32.xlu0 %v2406_v51  ;;  %v2404_v48 = vmul.f32 %v4376_v18, %v4376_v18 }
 0x249   :  { %2461 = vadd.xlane.f32.xlu0 %v2404_v48 }
 0x24a   :  { %v3547_v21 = vpop.f32.mrf.mxu0 }
 0x24b   :  { %v2306_v29 = vadd.f32 %v3547_v21, %v4272_v57 }
 0x24c   :  { %v2149_v52 = vpop.f32.mrf.mxu0 }
 0x24d   :  { %v4386_v54 = vadd.f32 %v4310_v55, %v2306_v29  ;;  %v2304_v9 = vadd.f32 %v2149_v52, %v4281_v61 }
 0x24e   :  { %v3548_v7 = vpop.f32.mrf.mxu0 }
 0x24f   :  { %v4390_v1 = vadd.f32 %v4310_v55, %v2304_v9  ;;  %v2307_v33 = vadd.f32 %v3548_v7, %v4287_v3  ;;  %v2409_v37 = vmul.f32 %v4386_v54, %v4386_v54 }
 0x250   :  { %v2152_v23 = vpop.f32.mrf.mxu0 }
 0x251   :  { %v4396_v26 = vadd.f32 %v4310_v55, %v2307_v33  ;;  %v2305_v57 = vadd.f32 %v2152_v23, %v4293_v6  ;;  %2471 = vadd.xlane.f32.xlu1 %v2409_v37  ;;  %v2407_v61 = vmul.f32 %v4390_v1, %v4390_v1 }
 0x253   :  { %v4400_v41 = vadd.f32 %v4310_v55, %v2305_v57  ;;  %v2410_v31 = vmul.f32 %v4396_v26, %v4396_v26 }
 0x255   :  { %2467 = vadd.xlane.f32.xlu1 %v2407_v61  ;;  %2473 = vadd.xlane.f32.xlu0 %v2410_v31  ;;  %v2408_v3 = vmul.f32 %v4400_v41, %v4400_v41 }
 0x259   :  { %2469 = vadd.xlane.f32.xlu0 %v2408_v3 }
 0x25a   :  { %v3551_v5 = vpop.f32.mrf.mxu0 }
 0x25b   :  { %v2310_v8 = vadd.f32 %v3551_v5, %v4193_v11 }
 0x25c   :  { %v2165_v6 = vpop.f32.mrf.mxu0 }
 0x25d   :  { %v4410_v34 = vadd.f32 %v4310_v55, %v2310_v8  ;;  %v2308_v24 = vadd.f32 %v2165_v6, %v4197_v13 }
 0x25e   :  { %v3552_v28 = vpop.f32.mrf.mxu0 }
 0x25f   :  { %v4414_v46 = vadd.f32 %v4310_v55, %v2308_v24  ;;  %v2311_v45 = vadd.f32 %v3552_v28, %v4204_v16  ;;  %v2413_v59 = vmul.f32 %v4410_v34, %v4410_v34 }
 0x260   :  { %v2168_v39 = vpop.f32.mrf.mxu0 }
 0x261   :  { %v4420_v43 = vadd.f32 %v4310_v55, %v2311_v45  ;;  %v2309_v11 = vadd.f32 %v2168_v39, %v4208_v20  ;;  %2479 = vadd.xlane.f32.xlu1 %v2413_v59  ;;  %v2411_v13 = vmul.f32 %v4414_v46, %v4414_v46 }
 0x263   :  { %v4424_v51 = vadd.f32 %v4310_v55, %v2309_v11  ;;  %v2414_v48 = vmul.f32 %v4420_v43, %v4420_v43 }
 0x265   :  { %2475 = vadd.xlane.f32.xlu1 %v2411_v13  ;;  %2481 = vadd.xlane.f32.xlu0 %v2414_v48  ;;  %v2412_v16 = vmul.f32 %v4424_v51, %v4424_v51 }
 0x269   :  { %2477 = vadd.xlane.f32.xlu0 %v2412_v16 }
 0x26a   :  { %v3555_v21 = vpop.f32.mrf.mxu0 }
 0x26b   :  { %v2314_v29 = vadd.f32 %v3555_v21, %v4212_v22 }
 0x26c   :  { %v2181_v20 = vpop.f32.mrf.mxu0 }
 0x26d   :  { %v4434_v52 = vadd.f32 %v4310_v55, %v2314_v29  ;;  %v2312_v9 = vadd.f32 %v2181_v20, %v4219_v25 }
 0x26e   :  { %v3556_v7 = vpop.f32.mrf.mxu0 }
 0x26f   :  { %v4438_v33 = vadd.f32 %v4310_v55, %v2312_v9  ;;  %v2315_v37 = vadd.f32 %v3556_v7, %v4223_v27  ;;  %v2417_v23 = vmul.f32 %v4434_v52, %v4434_v52 }
 0x270   :  { %v2184_v57 = vpop.f32.mrf.mxu0 }
 0x271   :  { %v4444_v61 = vadd.f32 %v4310_v55, %v2315_v37  ;;  %v2313_v22 = vadd.f32 %v2184_v57, %v4225_v30  ;;  %2487 = vadd.xlane.f32.xlu1 %v2417_v23  ;;  %v2415_v25 = vmul.f32 %v4438_v33, %v4438_v33 }
 0x273   :  { %v4448_v31 = vadd.f32 %v4310_v55, %v2313_v22  ;;  %v2418_v3 = vmul.f32 %v4444_v61, %v4444_v61 }
 0x275   :  { %2483 = vadd.xlane.f32.xlu1 %v2415_v25  ;;  %2489 = vadd.xlane.f32.xlu0 %v2418_v3  ;;  %v2416_v27 = vmul.f32 %v4448_v31, %v4448_v31 }
 0x279   :  { %2485 = vadd.xlane.f32.xlu0 %v2416_v27 }
 0x27a   :  { %v3559_v5 = vpop.f32.mrf.mxu0 }
 0x27b   :  { %v2318_v8 = vadd.f32 %v3559_v5, %v4229_v32 }
 0x27c   :  { %v2197_v30 = vpop.f32.mrf.mxu0 }
 0x27d   :  { %v4458_v6 = vadd.f32 %v4310_v55, %v2318_v8  ;;  %v2316_v24 = vadd.f32 %v2197_v30, %v4231_v0 }
 0x27e   :  { %v3560_v28 = vpop.f32.mrf.mxu0 }
 0x27f   :  { %v4462_v45 = vadd.f32 %v4310_v55, %v2316_v24  ;;  %v2319_v59 = vadd.f32 %v3560_v28, %v4238_v35  ;;  %v2421_v39 = vmul.f32 %v4458_v6, %v4458_v6 }
 0x280   :  { %v2200_v11 = vpop.f32.mrf.mxu0 }
 0x281   :  { %v4468_v13 = vadd.f32 %v4310_v55, %v2319_v59  ;;  %v2317_v32 = vadd.f32 %v2200_v11, %v4240_v38  ;;  %2495 = vadd.xlane.f32.xlu1 %v2421_v39  ;;  %v2419_v0 = vmul.f32 %v4462_v45, %v4462_v45 }
 0x283   :  { %v4472_v48 = vadd.f32 %v4310_v55, %v2317_v32  ;;  %v2422_v16 = vmul.f32 %v4468_v13, %v4468_v13 }
 0x285   :  { %2491 = vadd.xlane.f32.xlu1 %v2419_v0  ;;  %2497 = vadd.xlane.f32.xlu0 %v2422_v16  ;;  %v2420_v35 = vmul.f32 %v4472_v48, %v4472_v48 }
 0x289   :  { %2493 = vadd.xlane.f32.xlu0 %v2420_v35 }
 0x28a   :  { %v3563_v21 = vpop.f32.mrf.mxu0 }
 0x28b   :  { %v2322_v29 = vadd.f32 %v3563_v21, %v4244_v40 }
 0x28c   :  { %v2213_v38 = vpop.f32.mrf.mxu0 }
 0x28d   :  { %v4482_v20 = vadd.f32 %v4310_v55, %v2322_v29  ;;  %v2320_v9 = vadd.f32 %v2213_v38, %v4249_v42 }
 0x28e   :  { %v3564_v7 = vpop.f32.mrf.mxu0 }
 0x28f   :  { %v4486_v37 = vadd.f32 %v4310_v55, %v2320_v9  ;;  %v2323_v23 = vadd.f32 %v3564_v7, %v4253_v44  ;;  %v2425_v57 = vmul.f32 %v4482_v20, %v4482_v20 }
 0x290   :  { %v2216_v22 = vpop.f32.mrf.mxu0 }
 0x291   :  { %v4492_v25 = vadd.f32 %v4310_v55, %v2323_v23  ;;  %v2321_v40 = vadd.f32 %v2216_v22, %v4255_v47  ;;  %2503 = vadd.xlane.f32.xlu1 %v2425_v57  ;;  %v2423_v42 = vmul.f32 %v4486_v37, %v4486_v37 }
 0x293   :  { %v4496_v3 = vadd.f32 %v4310_v55, %v2321_v40  ;;  %v2426_v27 = vmul.f32 %v4492_v25, %v4492_v25 }
 0x295   :  { %2499 = vadd.xlane.f32.xlu1 %v2423_v42  ;;  %2505 = vadd.xlane.f32.xlu0 %v2426_v27  ;;  %v2424_v44 = vmul.f32 %v4496_v3, %v4496_v3  ;;  %v4672_v27 = vld [vmem:[#allocation14_spill] sm:$0xff] }
 0x299   :  { %2501 = vadd.xlane.f32.xlu0 %v2424_v44 }
 0x29a   :  { %v3567_v5 = vpop.f32.mrf.mxu0 }
 0x29b   :  { %v2326_v8 = vadd.f32 %v3567_v5, %v4259_v49 }
 0x29c   :  { %v2229_v47 = vpop.f32.mrf.mxu0 }
 0x29d   :  { %v4506_v30 = vadd.f32 %v4310_v55, %v2326_v8  ;;  %v2324_v24 = vadd.f32 %v2229_v47, %v4261_v50 }
 0x29e   :  { %v3568_v28 = vpop.f32.mrf.mxu0 }
 0x29f   :  { %v4510_v59 = vadd.f32 %v4310_v55, %v2324_v24  ;;  %v2327_v39 = vadd.f32 %v3568_v28, %v4268_v53  ;;  %v2429_v11 = vmul.f32 %v4506_v30, %v4506_v30 }
 0x2a0   :  { %v2232_v32 = vpop.f32.mrf.mxu0 }
 0x2a1   :  { %v4516_v0 = vadd.f32 %v4310_v55, %v2327_v39  ;;  %v2325_v49 = vadd.f32 %v2232_v32, %v4270_v56  ;;  %2511 = vadd.xlane.f32.xlu1 %v2429_v11  ;;  %v2427_v50 = vmul.f32 %v4510_v59, %v4510_v59 }
 0x2a3   :  { %v4520_v16 = vadd.f32 %v4310_v55, %v2325_v49  ;;  %v2430_v35 = vmul.f32 %v4516_v0, %v4516_v0 }
 0x2a5   :  { %2507 = vadd.xlane.f32.xlu1 %v2427_v50  ;;  %2513 = vadd.xlane.f32.xlu0 %v2430_v35  ;;  %v2428_v53 = vmul.f32 %v4520_v16, %v4520_v16 }
 0x2a9   :  { %2509 = vadd.xlane.f32.xlu0 %v2428_v53 }
 0x2aa   :  { %v2448_v21 = vpop.xlane.xlu0 %2447  ;;  %v3571_v29 = vpop.f32.mrf.mxu0 }
 0x2ab   :  { %v2330_v56 = vadd.f32 %v3571_v29, %v4274_v58  ;;  %v2541_v38 = vmax.f32 %v2448_v21, 1e-24 }
 0x2ac   :  { %v2245_v9 = vpop.f32.mrf.mxu0 }
 0x2ad   :  { %v4530_v7 = vadd.f32 %v4310_v55, %v2330_v56  ;;  %v2328_v23 = vadd.f32 %v2245_v9, %v4279_v60  ;;  %3670 = vrsqrt.f32 %v2541_v38  ;;  %v4673_v60 = vld [vmem:[#allocation15_spill] sm:$0xff]  ;;  %v4674_v56 = vld [vmem:[#allocation16_spill] sm:$0xff] }
 0x2ae   :  { %v2444_v57 = vpop.xlane.xlu0 %2443  ;;  %v3572_v22 = vpop.f32.mrf.mxu0 }
 0x2af   :  { %v4534_v40 = vadd.f32 %v4310_v55, %v2328_v23  ;;  %v2539_v42 = vmax.f32 %v2444_v57, 1e-24  ;;  %v2331_v44 = vadd.f32 %v3572_v22, %v4672_v27  ;;  %v2433_v5 = vmul.f32 %v4530_v7, %v4530_v7  ;;  %v4675_v22 = vld [vmem:[#allocation17_spill] sm:$0xff] }
 0x2b0   :  { %v2446_v58 = vpop.xlane.xlu1 %2445  ;;  %v2248_v8 = vpop.f32.mrf.mxu0 }
 0x2b1   :  { %3672 = vrsqrt.f32 %v2539_v42  ;;  %v4540_v47 = vadd.f32 %v4310_v55, %v2331_v44  ;;  %v2540_v24 = vmax.f32 %v2446_v58, 1e-24  ;;  %v2329_v28 = vadd.f32 %v2248_v8, %v4673_v60  ;;  %2519 = vadd.xlane.f32.xlu1 %v2433_v5 }
 0x2b2   :  { %v2450_v39 = vpop.xlane.xlu0 %2449  ;;  %v2431_v11 = vmul.f32 %v4534_v40, %v4534_v40 }
 0x2b3   :  { %3674 = vrsqrt.f32 %v2540_v24  ;;  %v4546_v32 = vadd.f32 %v4310_v55, %v2329_v28  ;;  %v2542_v49 = vmax.f32 %v2450_v39, 1e-24  ;;  %v2434_v50 = vmul.f32 %v4540_v47, %v4540_v47 }
 0x2b5   :  { %3676 = vrsqrt.f32 %v2542_v49  ;;  %2515 = vadd.xlane.f32.xlu1 %v2431_v11  ;;  %2521 = vadd.xlane.f32.xlu0 %v2434_v50  ;;  %v2432_v35 = vmul.f32 %v4546_v32, %v4546_v32  ;;  %v4676_v11 = vld [vmem:[#allocation18_spill] sm:$0xff] }
 0x2b9   :  { %2517 = vadd.xlane.f32.xlu0 %v2432_v35 }
 0x2ba   :  { %v2456_v53 = vpop.xlane.xlu1 %2455  ;;  %v3575_v21 = vpop.f32.mrf.mxu0 }
 0x2bb   :  { %v2545_v29 = vmax.f32 %v2456_v53, 1e-24  ;;  %v2334_v38 = vadd.f32 %v3575_v21, %v4674_v56  ;;  %v3671_v23 = vpop.eup %3670  ;;  %v4677_v56 = vld [vmem:[#allocation19_spill] sm:$0xff] }
 0x2bc   :  { %v2261_v9 = vpop.f32.mrf.mxu0  ;;  %v2637_v35 = vmul.f32 %v3671_v23, %v4314_v10 }
 0x2bd   :  { %3678 = vrsqrt.f32 %v2545_v29  ;;  %v4554_v57 = vadd.f32 %v4310_v55, %v2334_v38  ;;  %v2332_v42 = vadd.f32 %v2261_v9, %v4675_v22 }
 0x2be   :  { %v3673_v27 = vpop.eup %3672  ;;  %v2452_v44 = vpop.xlane.xlu1 %2451 }
 0x2bf   :  { %v2458_v5 = vpop.xlane.xlu0 %2457  ;;  %v2635_v58 = vmul.f32 %v3673_v27, %v4318_v19  ;;  %v2543_v8 = vmax.f32 %v2452_v44, 1e-24  ;;  %v3576_v60 = vpop.f32.mrf.mxu0  ;;  %v4559_v39 = vadd.f32 %v4310_v55, %v2332_v42  ;;  %v2437_v50 = vmul.f32 %v4554_v57, %v4554_v57 }
 0x2c0   :  { %v2546_v24 = vmax.f32 %v2458_v5, 1e-24  ;;  %v3675_v28 = vpop.eup %3674  ;;  %v2335_v49 = vadd.f32 %v3576_v60, %v4676_v11  ;;  %v2685_v5 = vmax.f32 %v2637_v35, 0.0  ;;  %v4678_v35 = vld [vmem:[#allocation20_spill] sm:$0xff] }
 0x2c1   :  { %v2636_v53 = vmul.f32 %v3675_v28, %v4328_v17  ;;  %3680 = vrsqrt.f32 %v2543_v8  ;;  %v2264_v21 = vpop.f32.mrf.mxu0  ;;  %2527 = vadd.xlane.f32.xlu1 %v2437_v50  ;;  %v2683_v22 = vmax.f32 %v2635_v58, 0.0  ;;  %v2435_v17 = vmul.f32 %v4559_v39, %v4559_v39 }
 0x2c2   :  { %v3677_v29 = vpop.eup %3676  ;;  %3682 = vrsqrt.f32 %v2546_v24  ;;  %v4567_v19 = vadd.f32 %v4310_v55, %v2335_v49  ;;  %v2333_v38 = vadd.f32 %v2264_v21, %v4677_v56 }
 0x2c3   :  { %v2454_v9 = vpop.xlane.xlu0 %2453  ;;  %v2684_v42 = vmax.f32 %v2636_v53, 0.0  ;;  %v2638_v27 = vmul.f32 %v3677_v29, %v4325_v12  ;;  %v4679_v29 = vld [vmem:[#allocation21_spill] sm:$0xff] }
 0x2c4   :  { %v2544_v44 = vmax.f32 %v2454_v9, 1e-24  ;;  %v4572_v10 = vadd.f32 %v4310_v55, %v2333_v38  ;;  %v2438_v23 = vmul.f32 %v4567_v19, %v4567_v19 }
 0x2c5   :  { %v3153_v8 = vpack.c.bf16 %v2684_v42, %v2683_v22  ;;  %v2686_v24 = vmax.f32 %v2638_v27, 0.0  ;;  %2523 = vadd.xlane.f32.xlu1 %v2435_v17 }
 0x2c6   :  { %3684 = vrsqrt.f32 %v2544_v44  ;;  %2529 = vadd.xlane.f32.xlu0 %v2438_v23  ;;  %v2436_v12 = vmul.f32 %v4572_v10, %v4572_v10 }
 0x2c7   :  { %3154 = vst [vmem:[#allocation10] sm:$0xff] %v3153_v8   ;;  %v3158_v58 = vpack.c.bf16 %v2686_v24, %v2685_v5 }
 0x2c9   :  { %3270 = vst [vmem:[#allocation10 + $0x8] sm:$0xff] %v3158_v58  }
 0x2ca   :  { %v3679_v60 = vpop.eup %3678  ;;  %2525 = vadd.xlane.f32.xlu0 %v2436_v12  ;;  %v2464_v28 = vpop.xlane.xlu1 %2463 }
 0x2cb   :  { %v3579_v11 = vpop.f32.mrf.mxu0  ;;  %v2549_v49 = vmax.f32 %v2464_v28, 1e-24  ;;  %v2641_v50 = vmul.f32 %v3679_v60, %v4338_v2 }
 0x2cc   :  { %v2338_v21 = vadd.f32 %v3579_v11, %v4678_v35  ;;  %v4680_v11 = vld [vmem:[#allocation22_spill] sm:$0xff] }
 0x2cd   :  { %v2277_v53 = vpop.f32.mrf.mxu0  ;;  %3686 = vrsqrt.f32 %v2549_v49  ;;  %v2689_v5 = vmax.f32 %v2641_v50, 0.0 }
 0x2ce   :  { %v2336_v56 = vadd.f32 %v2277_v53, %v4679_v29  ;;  %v3681_v38 = vpop.eup %3680  ;;  %v2460_v9 = vpop.xlane.xlu1 %2459  ;;  %v4589_v24 = vadd.f32 %v4310_v55, %v2338_v21  ;;  %v4681_v53 = vld [vmem:[#allocation23_spill] sm:$0xff] }
 0x2cf   :  { %v2466_v22 = vpop.xlane.xlu0 %2465  ;;  %v3683_v42 = vpop.eup %3682  ;;  %v2547_v44 = vmax.f32 %v2460_v9, 1e-24  ;;  %v2639_v2 = vmul.f32 %v3681_v38, %v4342_v14 }
 0x2d0   :  { %v4584_v27 = vadd.f32 %v4310_v55, %v2336_v56  ;;  %v2550_v17 = vmax.f32 %v2466_v22, 1e-24  ;;  %v3580_v23 = vpop.f32.mrf.mxu0  ;;  %v2642_v8 = vmul.f32 %v3683_v42, %v4348_v4  ;;  %v2441_v9 = vmul.f32 %v4589_v24, %v4589_v24 }
 0x2d1   :  { %3688 = vrsqrt.f32 %v2547_v44  ;;  %v2339_v49 = vadd.f32 %v3580_v23, %v4680_v11  ;;  %v2687_v56 = vmax.f32 %v2639_v2, 0.0 }
 0x2d2   :  { %v2280_v58 = vpop.f32.mrf.mxu0  ;;  %v2439_v12 = vmul.f32 %v4584_v27, %v4584_v27  ;;  %v2690_v28 = vmax.f32 %v2642_v8, 0.0  ;;  %3690 = vrsqrt.f32 %v2550_v17 }
 0x2d3   :  { %v3685_v60 = vpop.eup %3684  ;;  %v2337_v35 = vadd.f32 %v2280_v58, %v4681_v53  ;;  %v2462_v50 = vpop.xlane.xlu0 %2461  ;;  %v4602_v22 = vadd.f32 %v4310_v55, %v2339_v49 }
 0x2d4   :  { %v2640_v4 = vmul.f32 %v3685_v60, %v4352_v62  ;;  %v2548_v29 = vmax.f32 %v2462_v50, 1e-24  ;;  %2531 = vadd.xlane.f32.xlu1 %v2439_v12  ;;  %v3168_v14 = vpack.c.bf16 %v2690_v28, %v2689_v5 }
 0x2d5   :  { %v4597_v21 = vadd.f32 %v4310_v55, %v2337_v35  ;;  %v2442_v17 = vmul.f32 %v4602_v22, %v4602_v22 }
 0x2d6   :  { %v2688_v38 = vmax.f32 %v2640_v4, 0.0  ;;  %3692 = vrsqrt.f32 %v2548_v29  ;;  %3272 = vst [vmem:[#allocation10 + $0x18] sm:$0xff] %v3168_v14  }
 0x2d7   :  { %v2440_v42 = vmul.f32 %v4597_v21, %v4597_v21 }
 0x2d8   :  { %v3163_v62 = vpack.c.bf16 %v2688_v38, %v2687_v56  ;;  %2535 = vadd.xlane.f32.xlu1 %v2441_v9 }
 0x2d9   :  { %2533 = vadd.xlane.f32.xlu0 %v2440_v42 }
 0x2da   :  { %3271 = vst [vmem:[#allocation10 + $0x10] sm:$0xff] %v3163_v62   ;;  %v2472_v44 = vpop.xlane.xlu1 %2471  ;;  %v3687_v23 = vpop.eup %3686 }
 0x2db   :  { %v2553_v5 = vmax.f32 %v2472_v44, 1e-24  ;;  %v2645_v2 = vmul.f32 %v3687_v23, %v4362_v63 }
 0x2dd   :  { %2537 = vadd.xlane.f32.xlu0 %v2442_v17  ;;  %3694 = vrsqrt.f32 %v2553_v5  ;;  %v2693_v35 = vmax.f32 %v2645_v2, 0.0 }
 0x2de   :  { %v3689_v8 = vpop.eup %3688  ;;  %v2468_v55 = vpop.xlane.xlu1 %2467 }
 0x2df   :  { %v2474_v58 = vpop.xlane.xlu0 %2473  ;;  %v3691_v12 = vpop.eup %3690  ;;  %v2551_v60 = vmax.f32 %v2468_v55, 1e-24  ;;  %v2643_v49 = vmul.f32 %v3689_v8, %v4366_v36 }
 0x2e0   :  { %v2554_v28 = vmax.f32 %v2474_v58, 1e-24  ;;  %v2646_v11 = vmul.f32 %v3691_v12, %v4372_v15 }
 0x2e1   :  { %3696 = vrsqrt.f32 %v2551_v60  ;;  %v2691_v56 = vmax.f32 %v2643_v49, 0.0 }
 0x2e2   :  { %v2694_v50 = vmax.f32 %v2646_v11, 0.0  ;;  %3698 = vrsqrt.f32 %v2554_v28 }
 0x2e3   :  { %v3693_v53 = vpop.eup %3692  ;;  %v2470_v4 = vpop.xlane.xlu0 %2469 }
 0x2e4   :  { %v2644_v29 = vmul.f32 %v3693_v53, %v4376_v18  ;;  %v2552_v14 = vmax.f32 %v2470_v4, 1e-24  ;;  %v3178_v63 = vpack.c.bf16 %v2694_v50, %v2693_v35 }
 0x2e6   :  { %v2692_v38 = vmax.f32 %v2644_v29, 0.0  ;;  %3700 = vrsqrt.f32 %v2552_v14  ;;  %3274 = vst [vmem:[#allocation10 + $0x28] sm:$0xff] %v3178_v63  }
 0x2e8   :  { %v3173_v9 = vpack.c.bf16 %v2692_v38, %v2691_v56 }
 0x2ea   :  { %3273 = vst [vmem:[#allocation10 + $0x20] sm:$0xff] %v3173_v9   ;;  %v2480_v42 = vpop.xlane.xlu1 %2479  ;;  %v3695_v15 = vpop.eup %3694 }
 0x2eb   :  { %v2557_v62 = vmax.f32 %v2480_v42, 1e-24  ;;  %v2649_v44 = vmul.f32 %v3695_v15, %v4386_v54 }
 0x2ed   :  { %3702 = vrsqrt.f32 %v2557_v62  ;;  %v2697_v12 = vmax.f32 %v2649_v44, 0.0 }
 0x2ee   :  { %v3697_v36 = vpop.eup %3696  ;;  %v2476_v17 = vpop.xlane.xlu1 %2475 }
 0x2ef   :  { %v2482_v23 = vpop.xlane.xlu0 %2481  ;;  %v3699_v5 = vpop.eup %3698  ;;  %v2555_v8 = vmax.f32 %v2476_v17, 1e-24  ;;  %v2647_v55 = vmul.f32 %v3697_v36, %v4390_v1 }
 0x2f0   :  { %v2558_v18 = vmax.f32 %v2482_v23, 1e-24  ;;  %v2650_v2 = vmul.f32 %v3699_v5, %v4396_v26 }
 0x2f1   :  { %3704 = vrsqrt.f32 %v2555_v8  ;;  %v2695_v53 = vmax.f32 %v2647_v55, 0.0 }
 0x2f2   :  { %v2698_v60 = vmax.f32 %v2650_v2, 0.0  ;;  %3706 = vrsqrt.f32 %v2558_v18 }
 0x2f3   :  { %v3701_v58 = vpop.eup %3700  ;;  %v2478_v28 = vpop.xlane.xlu0 %2477 }
 0x2f4   :  { %v2648_v11 = vmul.f32 %v3701_v58, %v4400_v41  ;;  %v2556_v49 = vmax.f32 %v2478_v28, 1e-24  ;;  %v3188_v54 = vpack.c.bf16 %v2698_v60, %v2697_v12 }
 0x2f6   :  { %v2696_v35 = vmax.f32 %v2648_v11, 0.0  ;;  %3708 = vrsqrt.f32 %v2556_v49  ;;  %3276 = vst [vmem:[#allocation10 + $0x38] sm:$0xff] %v3188_v54  }
 0x2f8   :  { %v3183_v50 = vpack.c.bf16 %v2696_v35, %v2695_v53 }
 0x2fa   :  { %3275 = vst [vmem:[#allocation10 + $0x30] sm:$0xff] %v3183_v50   ;;  %v2488_v4 = vpop.xlane.xlu1 %2487  ;;  %v3703_v26 = vpop.eup %3702 }
 0x2fb   :  { %v2561_v29 = vmax.f32 %v2488_v4, 1e-24  ;;  %v2653_v14 = vmul.f32 %v3703_v26, %v4410_v34 }
 0x2fd   :  { %3710 = vrsqrt.f32 %v2561_v29  ;;  %v2701_v36 = vmax.f32 %v2653_v14, 0.0 }
 0x2fe   :  { %v3705_v1 = vpop.eup %3704  ;;  %v2484_v63 = vpop.xlane.xlu1 %2483 }
 0x2ff   :  { %v2490_v56 = vpop.xlane.xlu0 %2489  ;;  %v3707_v38 = vpop.eup %3706  ;;  %v2559_v9 = vmax.f32 %v2484_v63, 1e-24  ;;  %v2651_v15 = vmul.f32 %v3705_v1, %v4414_v46 }
 0x300   :  { %v2562_v41 = vmax.f32 %v2490_v56, 1e-24  ;;  %v2654_v42 = vmul.f32 %v3707_v38, %v4420_v43 }
 0x301   :  { %3712 = vrsqrt.f32 %v2559_v9  ;;  %v2699_v8 = vmax.f32 %v2651_v15, 0.0 }
 0x302   :  { %v2702_v44 = vmax.f32 %v2654_v42, 0.0  ;;  %3714 = vrsqrt.f32 %v2562_v41 }
 0x303   :  { %v3709_v62 = vpop.eup %3708  ;;  %v2486_v17 = vpop.xlane.xlu0 %2485 }
 0x304   :  { %v2652_v23 = vmul.f32 %v3709_v62, %v4424_v51  ;;  %v2560_v5 = vmax.f32 %v2486_v17, 1e-24  ;;  %v3198_v34 = vpack.c.bf16 %v2702_v44, %v2701_v36 }
 0x306   :  { %v2700_v18 = vmax.f32 %v2652_v23, 0.0  ;;  %3716 = vrsqrt.f32 %v2560_v5  ;;  %3278 = vst [vmem:[#allocation10 + $0x48] sm:$0xff] %v3198_v34  }
 0x308   :  { %v3193_v2 = vpack.c.bf16 %v2700_v18, %v2699_v8 }
 0x30a   :  { %3277 = vst [vmem:[#allocation10 + $0x40] sm:$0xff] %v3193_v2   ;;  %v2496_v55 = vpop.xlane.xlu1 %2495  ;;  %v3711_v43 = vpop.eup %3710 }
 0x30b   :  { %v2565_v58 = vmax.f32 %v2496_v55, 1e-24  ;;  %v2657_v12 = vmul.f32 %v3711_v43, %v4434_v52 }
 0x30d   :  { %3718 = vrsqrt.f32 %v2565_v58  ;;  %v2705_v50 = vmax.f32 %v2657_v12, 0.0 }
 0x30e   :  { %v3713_v46 = vpop.eup %3712  ;;  %v2492_v60 = vpop.xlane.xlu1 %2491 }
 0x30f   :  { %v2498_v28 = vpop.xlane.xlu0 %2497  ;;  %v3715_v11 = vpop.eup %3714  ;;  %v2563_v49 = vmax.f32 %v2492_v60, 1e-24  ;;  %v2655_v53 = vmul.f32 %v3713_v46, %v4438_v33 }
 0x310   :  { %v2566_v51 = vmax.f32 %v2498_v28, 1e-24  ;;  %v2658_v54 = vmul.f32 %v3715_v11, %v4444_v61 }
 0x311   :  { %3720 = vrsqrt.f32 %v2563_v49  ;;  %v2703_v14 = vmax.f32 %v2655_v53, 0.0 }
 0x312   :  { %v2706_v4 = vmax.f32 %v2658_v54, 0.0  ;;  %3722 = vrsqrt.f32 %v2566_v51 }
 0x313   :  { %v3717_v35 = vpop.eup %3716  ;;  %v2494_v26 = vpop.xlane.xlu0 %2493 }
 0x314   :  { %v2656_v29 = vmul.f32 %v3717_v35, %v4448_v31  ;;  %v2564_v1 = vmax.f32 %v2494_v26, 1e-24  ;;  %v3208_v52 = vpack.c.bf16 %v2706_v4, %v2705_v50 }
 0x316   :  { %v2704_v63 = vmax.f32 %v2656_v29, 0.0  ;;  %3724 = vrsqrt.f32 %v2564_v1  ;;  %3280 = vst [vmem:[#allocation10 + $0x58] sm:$0xff] %v3208_v52  }
 0x318   :  { %v3203_v56 = vpack.c.bf16 %v2704_v63, %v2703_v14 }
 0x31a   :  { %3279 = vst [vmem:[#allocation10 + $0x50] sm:$0xff] %v3203_v56   ;;  %v2504_v38 = vpop.xlane.xlu1 %2503  ;;  %v3719_v61 = vpop.eup %3718 }
 0x31b   :  { %v2569_v9 = vmax.f32 %v2504_v38, 1e-24  ;;  %v2661_v41 = vmul.f32 %v3719_v61, %v4458_v6 }
 0x31d   :  { %3726 = vrsqrt.f32 %v2569_v9  ;;  %v2709_v5 = vmax.f32 %v2661_v41, 0.0 }
 0x31e   :  { %v3721_v33 = vpop.eup %3720  ;;  %v2500_v42 = vpop.xlane.xlu1 %2499 }
 0x31f   :  { %v2506_v15 = vpop.xlane.xlu0 %2505  ;;  %v3723_v62 = vpop.eup %3722  ;;  %v2567_v36 = vmax.f32 %v2500_v42, 1e-24  ;;  %v2659_v17 = vmul.f32 %v3721_v33, %v4462_v45 }
 0x320   :  { %v2570_v31 = vmax.f32 %v2506_v15, 1e-24  ;;  %v2662_v44 = vmul.f32 %v3723_v62, %v4468_v13 }
 0x321   :  { %3728 = vrsqrt.f32 %v2567_v36  ;;  %v2707_v55 = vmax.f32 %v2659_v17, 0.0 }
 0x322   :  { %v2710_v34 = vmax.f32 %v2662_v44, 0.0  ;;  %3730 = vrsqrt.f32 %v2570_v31 }
 0x323   :  { %v3725_v23 = vpop.eup %3724  ;;  %v2502_v8 = vpop.xlane.xlu0 %2501 }
 0x324   :  { %v2660_v18 = vmul.f32 %v3725_v23, %v4472_v48  ;;  %v2568_v2 = vmax.f32 %v2502_v8, 1e-24  ;;  %v3218_v6 = vpack.c.bf16 %v2710_v34, %v2709_v5 }
 0x326   :  { %v2708_v43 = vmax.f32 %v2660_v18, 0.0  ;;  %3732 = vrsqrt.f32 %v2568_v2  ;;  %3282 = vst [vmem:[#allocation10 + $0x68] sm:$0xff] %v3218_v6  }
 0x328   :  { %v3213_v58 = vpack.c.bf16 %v2708_v43, %v2707_v55 }
 0x32a   :  { %3281 = vst [vmem:[#allocation10 + $0x60] sm:$0xff] %v3213_v58   ;;  %v2512_v46 = vpop.xlane.xlu1 %2511  ;;  %v3727_v13 = vpop.eup %3726 }
 0x32b   :  { %v2573_v12 = vmax.f32 %v2512_v46, 1e-24  ;;  %v2665_v60 = vmul.f32 %v3727_v13, %v4482_v20 }
 0x32d   :  { %3734 = vrsqrt.f32 %v2573_v12  ;;  %v2713_v50 = vmax.f32 %v2665_v60, 0.0 }
 0x32e   :  { %v3729_v45 = vpop.eup %3728  ;;  %v2508_v28 = vpop.xlane.xlu1 %2507 }
 0x32f   :  { %v2514_v11 = vpop.xlane.xlu0 %2513  ;;  %v3731_v49 = vpop.eup %3730  ;;  %v2571_v51 = vmax.f32 %v2508_v28, 1e-24  ;;  %v2663_v53 = vmul.f32 %v3729_v45, %v4486_v37 }
 0x330   :  { %v2574_v48 = vmax.f32 %v2514_v11, 1e-24  ;;  %v2666_v54 = vmul.f32 %v3731_v49, %v4492_v25 }
 0x331   :  { %3736 = vrsqrt.f32 %v2571_v51  ;;  %v2711_v52 = vmax.f32 %v2663_v53, 0.0 }
 0x332   :  { %v2714_v4 = vmax.f32 %v2666_v54, 0.0  ;;  %3738 = vrsqrt.f32 %v2574_v48 }
 0x333   :  { %v3733_v35 = vpop.eup %3732  ;;  %v2510_v26 = vpop.xlane.xlu0 %2509 }
 0x334   :  { %v2664_v29 = vmul.f32 %v3733_v35, %v4496_v3  ;;  %v2572_v1 = vmax.f32 %v2510_v26, 1e-24  ;;  %v3228_v20 = vpack.c.bf16 %v2714_v4, %v2713_v50 }
 0x336   :  { %v2712_v14 = vmax.f32 %v2664_v29, 0.0  ;;  %3740 = vrsqrt.f32 %v2572_v1  ;;  %3284 = vst [vmem:[#allocation10 + $0x78] sm:$0xff] %v3228_v20  }
 0x338   :  { %v3223_v63 = vpack.c.bf16 %v2712_v14, %v2711_v52 }
 0x33a   :  { %3283 = vst [vmem:[#allocation10 + $0x70] sm:$0xff] %v3223_v63   ;;  %v2520_v56 = vpop.xlane.xlu1 %2519  ;;  %v3735_v25 = vpop.eup %3734 }
 0x33b   :  { %v2577_v38 = vmax.f32 %v2520_v56, 1e-24  ;;  %v2669_v61 = vmul.f32 %v3735_v25, %v4506_v30 }
 0x33d   :  { %3742 = vrsqrt.f32 %v2577_v38  ;;  %v2717_v31 = vmax.f32 %v2669_v61, 0.0 }
 0x33e   :  { %v3737_v37 = vpop.eup %3736  ;;  %v2516_v9 = vpop.xlane.xlu1 %2515 }
 0x33f   :  { %v2522_v33 = vpop.xlane.xlu0 %2521  ;;  %v3739_v41 = vpop.eup %3738  ;;  %v2575_v42 = vmax.f32 %v2516_v9, 1e-24  ;;  %v2667_v62 = vmul.f32 %v3737_v37, %v4510_v59 }
 0x340   :  { %v2578_v3 = vmax.f32 %v2522_v33, 1e-24  ;;  %v2670_v15 = vmul.f32 %v3739_v41, %v4516_v0 }
 0x341   :  { %3744 = vrsqrt.f32 %v2575_v42  ;;  %v2715_v34 = vmax.f32 %v2667_v62, 0.0 }
 0x342   :  { %v2718_v44 = vmax.f32 %v2670_v15, 0.0  ;;  %3746 = vrsqrt.f32 %v2578_v3 }
 0x343   :  { %v3741_v36 = vpop.eup %3740  ;;  %v2518_v17 = vpop.xlane.xlu0 %2517 }
 0x344   :  { %v2668_v23 = vmul.f32 %v3741_v36, %v4520_v16  ;;  %v2576_v5 = vmax.f32 %v2518_v17, 1e-24  ;;  %v3238_v30 = vpack.c.bf16 %v2718_v44, %v2717_v31 }
 0x346   :  { %v2716_v8 = vmax.f32 %v2668_v23, 0.0  ;;  %3748 = vrsqrt.f32 %v2576_v5  ;;  %3286 = vst [vmem:[#allocation10 + $0x88] sm:$0xff] %v3238_v30  }
 0x348   :  { %v3233_v18 = vpack.c.bf16 %v2716_v8, %v2715_v34 }
 0x34a   :  { %3285 = vst [vmem:[#allocation10 + $0x80] sm:$0xff] %v3233_v18   ;;  %v3743_v2 = vpop.eup %3742  ;;  %v2528_v0 = vpop.xlane.xlu1 %2527 }
 0x34b   :  { %v2581_v6 = vmax.f32 %v2528_v0, 1e-24  ;;  %v2673_v55 = vmul.f32 %v3743_v2, %v4530_v7 }
 0x34d   :  { %3750 = vrsqrt.f32 %v2581_v6  ;;  %v2721_v28 = vmax.f32 %v2673_v55, 0.0 }
 0x34e   :  { %v3745_v59 = vpop.eup %3744  ;;  %v2524_v58 = vpop.xlane.xlu1 %2523 }
 0x34f   :  { %v3747_v43 = vpop.eup %3746  ;;  %v2530_v46 = vpop.xlane.xlu0 %2529  ;;  %v2579_v13 = vmax.f32 %v2524_v58, 1e-24  ;;  %v2671_v45 = vmul.f32 %v3745_v59, %v4534_v40 }
 0x350   :  { %v2674_v16 = vmul.f32 %v3747_v43, %v4540_v47  ;;  %v2582_v12 = vmax.f32 %v2530_v46, 1e-24 }
 0x351   :  { %3752 = vrsqrt.f32 %v2579_v13  ;;  %v2719_v54 = vmax.f32 %v2671_v45, 0.0 }
 0x352   :  { %v2722_v11 = vmax.f32 %v2674_v16, 0.0  ;;  %3754 = vrsqrt.f32 %v2582_v12 }
 0x353   :  { %v3749_v60 = vpop.eup %3748  ;;  %v2526_v51 = vpop.xlane.xlu0 %2525 }
 0x354   :  { %v2672_v49 = vmul.f32 %v3749_v60, %v4546_v32  ;;  %v3248_v48 = vpack.c.bf16 %v2722_v11, %v2721_v28  ;;  %v2580_v7 = vmax.f32 %v2526_v51, 1e-24 }
 0x356   :  { %v2720_v53 = vmax.f32 %v2672_v49, 0.0  ;;  %3288 = vst [vmem:[#allocation10 + $0x98] sm:$0xff] %v3248_v48   ;;  %3756 = vrsqrt.f32 %v2580_v7 }
 0x358   :  { %v3243_v35 = vpack.c.bf16 %v2720_v53, %v2719_v54 }
 0x35a   :  { %3287 = vst [vmem:[#allocation10 + $0x90] sm:$0xff] %v3243_v35   ;;  %v3751_v47 = vpop.eup %3750 }
 0x35b   :  { %v2677_v26 = vmul.f32 %v3751_v47, %v4554_v57 }
 0x35d   :  { %v2532_v50 = vpop.xlane.xlu1 %2531  ;;  %v2725_v25 = vmax.f32 %v2677_v26, 0.0 }
 0x35e   :  { %v2583_v4 = vmax.f32 %v2532_v50, 1e-24  ;;  %v3753_v40 = vpop.eup %3752 }
 0x35f   :  { %v3755_v29 = vpop.eup %3754  ;;  %v2675_v14 = vmul.f32 %v3753_v40, %v4559_v39 }
 0x360   :  { %3758 = vrsqrt.f32 %v2583_v4  ;;  %v2678_v32 = vmul.f32 %v3755_v29, %v4567_v19 }
 0x361   :  { %v2536_v1 = vpop.xlane.xlu1 %2535  ;;  %v2723_v57 = vmax.f32 %v2675_v14, 0.0 }
 0x362   :  { %v2585_v20 = vmax.f32 %v2536_v1, 1e-24  ;;  %v2534_v52 = vpop.xlane.xlu0 %2533  ;;  %v2726_v38 = vmax.f32 %v2678_v32, 0.0 }
 0x363   :  { %v2584_v63 = vmax.f32 %v2534_v52, 1e-24  ;;  %v3757_v56 = vpop.eup %3756 }
 0x364   :  { %3760 = vrsqrt.f32 %v2585_v20  ;;  %v2676_v37 = vmul.f32 %v3757_v56, %v4572_v10  ;;  %v3258_v61 = vpack.c.bf16 %v2726_v38, %v2725_v25 }
 0x365   :  { %3762 = vrsqrt.f32 %v2584_v63 }
 0x366   :  { %v2538_v9 = vpop.xlane.xlu0 %2537  ;;  %v2724_v33 = vmax.f32 %v2676_v37, 0.0  ;;  %3290 = vst [vmem:[#allocation10 + $0xa8] sm:$0xff] %v3258_v61  }
 0x367   :  { %v2586_v41 = vmax.f32 %v2538_v9, 1e-24 }
 0x368   :  { %v3253_v42 = vpack.c.bf16 %v2724_v33, %v2723_v57 }
 0x369   :  { %3764 = vrsqrt.f32 %v2586_v41 }
 0x36a   :  { %3289 = vst [vmem:[#allocation10 + $0xa0] sm:$0xff] %v3253_v42  }
 0x36d   :  { %v3759_v19 = vpop.eup %3758 }
 0x36e   :  { %v2679_v39 = vmul.f32 %v3759_v19, %v4584_v27 }
 0x370   :  { %v2727_v36 = vmax.f32 %v2679_v39, 0.0 }
 0x371   :  { %v3761_v3 = vpop.eup %3760 }
 0x372   :  { %v3763_v15 = vpop.eup %3762  ;;  %v2681_v10 = vmul.f32 %v3761_v3, %v4589_v24 }
 0x373   :  { %v2680_v62 = vmul.f32 %v3763_v15, %v4597_v21 }
 0x374   :  { %v2729_v5 = vmax.f32 %v2681_v10, 0.0 }
 0x375   :  { %v2728_v31 = vmax.f32 %v2680_v62, 0.0 }
 0x376   :  { %v3765_v44 = vpop.eup %3764 }
 0x377   :  { %v3263_v17 = vpack.c.bf16 %v2728_v31, %v2727_v36  ;;  %v2682_v23 = vmul.f32 %v3765_v44, %v4602_v22 }
 0x379   :  { %3291 = vst [vmem:[#allocation10 + $0xb0] sm:$0xff] %v3263_v17   ;;  %v2730_v30 = vmax.f32 %v2682_v23, 0.0 }
 0x37b   :  { %v3268_v34 = vpack.c.bf16 %v2730_v30, %v2729_v5 }
 0x37d   :  { %3292 = vst [vmem:[#allocation10 + $0xb8] sm:$0xff] %v3268_v34  }
 0x37e   :  { %3837 = shalt.err (!%p3834_p5)
}
 0x37f   :  { %2982 = dma.vmem_to_hbm [thread:$0]  %s2977_s23, 3072, %s4661_s7, [#allocation6], %s3854_s29, %s3854_s29, %s3855_s30  }
 0x380   :  { %3850 = dma.done.wait [#allocation6], 3072  }
 0x381   :  { %3851 = vsyncadd [#allocation6], 4294964224 }
 0x382   :  { %2986 = vsyncpa [#allocation5], 1 }
 0x383   :  { %2987 = vsyncpa [#allocation8], 1 }
 0x384   :  { %2988 = vsyncpa [#allocation6], 1 }

</bundles_post_ra>
